<compile_context>
chip_gen: v6e
topology: v6e:2x2x1
jax: 0.10.0
libtpu: 0.0.40
codegen_flags: <defaults>
</compile_context>

<pallas_src>
import jax
import jax.numpy as jnp
import numpy as np
from jax import lax
from jax.experimental import pallas as pl
from jax.experimental.pallas import tpu as pltpu

THRESHOLD = 0.5
NEG_POS_RATIO = 3
ALPHA = 1.0


def multibox_kernel(locs_ref, scores_ref, pfeat_ref, boxes_ref, labels_ref, out_ref):
    f32 = jnp.float32
    locs = locs_ref[...]        # (BB, 4, P)  predicted gcxgcy offsets, channel-major
    scores = scores_ref[...]    # (BB, C, P)  class logits, class-major
    pf = pfeat_ref[...]         # (16, P)     precomputed prior features
    boxes = boxes_ref[...]      # (BB, M, 4)  GT boxes in xyxy
    labels = labels_ref[...]    # (BB, M, 1)  GT labels (float-valued ints, >0)

    BB = locs.shape[0]
    P = locs.shape[2]
    C = scores.shape[1]
    M = boxes.shape[1]

    # priors-only quantities (hoisted to the wrapper, grid-invariant)
    pcx      = pf[0:1, :]
    pcy      = pf[1:2, :]
    px1      = pf[2:3, :]
    py1      = pf[3:4, :]
    px2      = pf[4:5, :]
    py2      = pf[5:6, :]
    area_p   = pf[6:7, :]
    inv_pw10 = pf[7:8, :]       # 10 / pw
    inv_ph10 = pf[8:9, :]       # 10 / ph
    inv_pw   = pf[9:10, :]      # 1 / pw
    inv_ph   = pf[10:11, :]     # 1 / ph

    bx1 = boxes[:, :, 0:1]      # (BB, M, 1)
    by1 = boxes[:, :, 1:2]
    bx2 = boxes[:, :, 2:3]
    by2 = boxes[:, :, 3:4]

    # Jaccard overlap, (BB, M, P).  IoU divide kept exact: an approximate
    # reciprocal could flip the 0.5-threshold positive/negative decision.
    iw = jnp.maximum(jnp.minimum(bx2, px2) - jnp.maximum(bx1, px1), 0.0)
    ih = jnp.maximum(jnp.minimum(by2, py2) - jnp.maximum(by1, py1), 0.0)
    inter = iw * ih
    area_b = (bx2 - bx1) * (by2 - by1)                 # (BB, M, 1)
    overlap = inter / (area_b + area_p - inter)        # (BB, M, P)

    m_iota = lax.broadcasted_iota(jnp.int32, (BB, M, P), 1)
    p_iota = lax.broadcasted_iota(jnp.int32, (BB, M, P), 2)

    # best object for each prior (first-max argmax over objects)
    ov_max0 = jnp.max(overlap, axis=1, keepdims=True)                          # (BB,1,P)
    obj_for_prior = jnp.min(jnp.where(overlap == ov_max0, m_iota, M),
                            axis=1, keepdims=True)                             # (BB,1,P)
    # best prior for each object (first-max argmax over priors)
    ov_max1 = jnp.max(overlap, axis=2, keepdims=True)                          # (BB,M,1)
    prior_for_obj = jnp.min(jnp.where(overlap == ov_max1, p_iota, P),
                            axis=2, keepdims=True)                             # (BB,M,1)

    # force-assign every object to its best prior (deterministic last-wins)
    claimed = prior_for_obj == p_iota                                          # (BB,M,P)
    new_obj = jnp.max(jnp.where(claimed, m_iota, -1), axis=1, keepdims=True)   # (BB,1,P)
    override = new_obj >= 0
    obj_for_prior = jnp.where(override, new_obj, obj_for_prior)
    ov_for_prior = jnp.where(override, 1.0, ov_max0)

    onehot = (obj_for_prior == m_iota).astype(f32)                             # (BB,M,P)

    # gather labels / GT boxes of the assigned objects.
    # TODO(synk): for large M fuse these five gathers into one (5,M)@(M,P) MXU matmul.
    label_for_prior = jnp.sum(labels * onehot, axis=1, keepdims=True)          # (BB,1,P)
    label_for_prior = jnp.where(ov_for_prior < THRESHOLD, 0.0, label_for_prior)
    positive = label_for_prior != 0.0                                          # (BB,1,P)

    gx1 = jnp.sum(bx1 * onehot, axis=1, keepdims=True)
    gy1 = jnp.sum(by1 * onehot, axis=1, keepdims=True)
    gx2 = jnp.sum(bx2 * onehot, axis=1, keepdims=True)
    gy2 = jnp.sum(by2 * onehot, axis=1, keepdims=True)

    # xy -> cxcy -> gcxgcy (SSD encoding), reciprocal-multiplies only
    gcx = (gx1 + gx2) * 0.5
    gcy = (gy1 + gy2) * 0.5
    gw = gx2 - gx1
    gh = gy2 - gy1
    t0 = (gcx - pcx) * inv_pw10
    t1 = (gcy - pcy) * inv_ph10
    t2 = jnp.log(gw * inv_pw) * 5.0
    t3 = jnp.log(gh * inv_ph) * 5.0

    # localization L1 (sum over positives; mean is taken in the wrapper)
    abs_diff = (jnp.abs(locs[:, 0:1, :] - t0) + jnp.abs(locs[:, 1:2, :] - t1)
                + jnp.abs(locs[:, 2:3, :] - t2) + jnp.abs(locs[:, 3:4, :] - t3))
    loc_sum_b = jnp.sum(jnp.where(positive, abs_diff, 0.0), axis=2, keepdims=True)  # (BB,1,1)
    n_pos_b = jnp.sum(positive.astype(f32), axis=2, keepdims=True)                  # (BB,1,1)

    # per-prior cross entropy: logsumexp - logit[true_class]
    smax = jnp.max(scores, axis=1, keepdims=True)                              # (BB,1,P)
    lse = smax + jnp.log(jnp.sum(jnp.exp(scores - smax), axis=1, keepdims=True))
    c_iota = lax.broadcasted_iota(jnp.int32, (BB, C, P), 1)
    tc = label_for_prior.astype(jnp.int32)                                     # (BB,1,P)
    score_true = jnp.sum(jnp.where(c_iota == tc, scores, 0.0), axis=1, keepdims=True)
    ce = lse - score_true                                                      # (BB,1,P)
    ce_pos_b = jnp.sum(jnp.where(positive, ce, 0.0), axis=2, keepdims=True)    # (BB,1,1)

    # hard-negative mining: sum of the top-(3*n_pos) negative CE values per
    # image, sort-free via a stable descending pairwise rank.  The column
    # broadcast of v is built with a sublane broadcast + XLU transpose (no
    # eye/diagonal extraction), and the P^2 0/1 mask is reduced on the MXU
    # (bf16 operands, f32 accumulate -> exact integer counts).
    # TODO(synk): block the (P,P) rank computation over P-column tiles for
    #             realistic SSD prior counts (P=8732) to keep VMEM bounded.
    v = jnp.where(positive, 0.0, ce)                                           # (BB,1,P)
    ii = lax.broadcasted_iota(jnp.int32, (P, P), 0)
    jj = lax.broadcasted_iota(jnp.int32, (P, P), 1)
    lower_tri = ii < jj                                                        # (P,P), hoisted
    ones_lhs = jnp.ones((8, P), jnp.bfloat16)                                  # MXU-friendly LHS

    zero11 = jnp.zeros((1, 1), f32)
    loc_total = zero11
    n_pos_total = zero11
    ce_pos_total = zero11
    ce_hard_total = zero11
    for b in range(BB):                       # static, small unrolled loop
        v_row = v[b]                                                           # (1,P)
        v_cols = jnp.broadcast_to(v_row, (P, P))                               # [i,j] = v[j]
        v_rows = jnp.transpose(v_cols)                                         # [i,j] = v[i] (XLU)
        gt = v_rows > v_cols
        eq_before = (v_rows == v_cols) & lower_tri
        mask_bf = (gt | eq_before).astype(jnp.bfloat16)                        # (P,P) of 0/1
        rank = jnp.dot(ones_lhs, mask_bf,
                       preferred_element_type=jnp.float32)[0:1, :]             # (1,P) exact counts
        k_b = n_pos_b[b] * float(NEG_POS_RATIO)                                # (1,1)
        hard = rank < k_b
        ce_hard_total = ce_hard_total + jnp.sum(jnp.where(hard, v_row, 0.0),
                                                axis=1, keepdims=True)
        loc_total = loc_total + loc_sum_b[b]
        n_pos_total = n_pos_total + n_pos_b[b]
        ce_pos_total = ce_pos_total + ce_pos_b[b]

    # write result rows directly (no (8,128) concat of broadcast rows)
    z = jnp.zeros((1, 128), f32)
    out_ref[0, 0:1, :] = z + loc_total
    out_ref[0, 1:2, :] = z + n_pos_total
    out_ref[0, 2:3, :] = z + ce_pos_total
    out_ref[0, 3:4, :] = z + ce_hard_total
    out_ref[0, 4:8, :] = jnp.zeros((4, 128), f32)


def _prior_features(priors_cxcy):
    """Grid-invariant priors-only math, computed once: (16, P) feature slab."""
    pr = priors_cxcy.astype(jnp.float32)                 # (P, 4) cxcywh
    pcx, pcy, pw, ph = pr[:, 0], pr[:, 1], pr[:, 2], pr[:, 3]
    px1 = pcx - pw * 0.5
    py1 = pcy - ph * 0.5
    px2 = pcx + pw * 0.5
    py2 = pcy + ph * 0.5
    area_p = (px2 - px1) * (py2 - py1)
    inv_pw = 1.0 / pw
    inv_ph = 1.0 / ph
    zeros = jnp.zeros_like(pcx)
    return jnp.stack([pcx, pcy, px1, py1, px2, py2, area_p,
                      10.0 * inv_pw, 10.0 * inv_ph, inv_pw, inv_ph,
                      zeros, zeros, zeros, zeros, zeros], axis=0)   # (16, P)


def multibox_loss(predicted_locs, predicted_scores, priors_cxcy, boxes, labels):
    """predicted_locs (B,P,4), predicted_scores (B,P,C), priors_cxcy (P,4) cxcywh,
    boxes (B,M,4) xyxy, labels (B,M) int (>0).  Returns (conf_loss, alpha*loc_loss)."""
    B, P, _ = predicted_locs.shape
    C = predicted_scores.shape[2]
    M = boxes.shape[1]

    # pack several images per grid step: fills vreg sublanes for all (1,P)
    # math and amortizes per-step pipeline overhead.
    BB = 1
    for cand in (8, 4, 2, 1):
        if B % cand == 0:
            BB = cand
            break
    n_blocks = B // BB
    # TODO(synk): pad the batch when B is not a multiple of the block size.

    # TODO(synk): keep locs/scores in their natural (B,P,4)/(B,P,C) layout and
    # transpose the small per-image tiles in-kernel (XLU) to avoid this extra
    # HBM round trip at real SSD sizes.
    locs_t = jnp.transpose(predicted_locs, (0, 2, 1)).astype(jnp.float32)      # (B,4,P)
    scores_t = jnp.transpose(predicted_scores, (0, 2, 1)).astype(jnp.float32)  # (B,C,P)
    pfeat = _prior_features(priors_cxcy)                                       # (16,P)
    boxes_f = boxes.astype(jnp.float32)                                        # (B,M,4)
    # TODO(synk): carry labels as int32 via SMEM/scalar-prefetch instead of f32.
    labels_f = labels.astype(jnp.float32)[:, :, None]                          # (B,M,1)

    out = pl.pallas_call(
        multibox_kernel,
        out_shape=jax.ShapeDtypeStruct((n_blocks, 8, 128), jnp.float32),
        grid_spec=pltpu.PrefetchScalarGridSpec(
            num_scalar_prefetch=0,
            grid=(n_blocks,),
            in_specs=[
                pl.BlockSpec((BB, 4, P), lambda i: (i, 0, 0)),
                pl.BlockSpec((BB, C, P), lambda i: (i, 0, 0)),
                pl.BlockSpec((16, P), lambda i: (0, 0)),
                pl.BlockSpec((BB, M, 4), lambda i: (i, 0, 0)),
                pl.BlockSpec((BB, M, 1), lambda i: (i, 0, 0)),
            ],
            out_specs=pl.BlockSpec((1, 8, 128), lambda i: (i, 0, 0)),
        ),
        compiler_params=pltpu.CompilerParams(
            # each step writes a distinct output block, no carried accumulator
            # -> safe to shard across v7x's two TensorCores; no-op on v5e/v6e.
            dimension_semantics=("parallel",),
            vmem_limit_bytes=32 * 1024 * 1024,
        ),
    )(locs_t, scores_t, pfeat, boxes_f, labels_f)

    stats = out[:, :4, 0]                       # (n_blocks, 4)
    loc_sum = jnp.sum(stats[:, 0])
    n_pos_total = jnp.sum(stats[:, 1])
    ce_pos = jnp.sum(stats[:, 2])
    ce_hard = jnp.sum(stats[:, 3])

    # guard the zero-positive batch (the PyTorch original would emit NaN/Inf)
    n_pos_safe = jnp.maximum(n_pos_total, 1.0)
    loc_loss = loc_sum / (n_pos_safe * 4.0)          # nn.L1Loss() mean over (n_pos, 4)
    conf_loss = (ce_hard + ce_pos) / n_pos_safe
    return conf_loss, ALPHA * loc_loss


def multibox_loss_ref(predicted_locs, predicted_scores, priors_cxcy, boxes, labels):
    """Pure-JAX reference mirroring the PyTorch forward (fixed M objects/image)."""
    B, P, _ = predicted_locs.shape
    priors_xy = jnp.concatenate([priors_cxcy[:, :2] - priors_cxcy[:, 2:] / 2,
                                 priors_cxcy[:, :2] + priors_cxcy[:, 2:] / 2], axis=1)
    total_loc = 0.0
    total_pos = 0.0
    total_ce_pos = 0.0
    total_ce_hard = 0.0
    for i in range(B):
        bxs = boxes[i]
        lbs = labels[i]
        M = bxs.shape[0]
        lo = jnp.maximum(bxs[:, None, :2], priors_xy[None, :, :2])
        hi = jnp.minimum(bxs[:, None, 2:], priors_xy[None, :, 2:])
        wh = jnp.clip(hi - lo, 0.0)
        inter = wh[..., 0] * wh[..., 1]
        area_b = (bxs[:, 2] - bxs[:, 0]) * (bxs[:, 3] - bxs[:, 1])
        area_p = (priors_xy[:, 2] - priors_xy[:, 0]) * (priors_xy[:, 3] - priors_xy[:, 1])
        overlap = inter / (area_b[:, None] + area_p[None, :] - inter)
        ov_prior = jnp.max(overlap, axis=0)
        obj_prior = jnp.argmax(overlap, axis=0)
        prior_obj = jnp.argmax(overlap, axis=1)
        claimed = prior_obj[:, None] == jnp.arange(P)[None, :]
        new_obj = jnp.max(jnp.where(claimed, jnp.arange(M)[:, None], -1), axis=0)
        override = new_obj >= 0
        obj_prior = jnp.where(override, new_obj, obj_prior)
        ov_prior = jnp.where(override, 1.0, ov_prior)
        label_prior = lbs[obj_prior]
        label_prior = jnp.where(ov_prior < THRESHOLD, 0, label_prior)
        pos = label_prior != 0
        gb = bxs[obj_prior]
        cxcy = jnp.concatenate([(gb[:, 2:] + gb[:, :2]) / 2, gb[:, 2:] - gb[:, :2]], axis=1)
        true_locs = jnp.concatenate(
            [(cxcy[:, :2] - priors_cxcy[:, :2]) / (priors_cxcy[:, 2:] / 10.0),
             jnp.log(cxcy[:, 2:] / priors_cxcy[:, 2:]) * 5.0], axis=1)
        abs_diff = jnp.sum(jnp.abs(predicted_locs[i] - true_locs), axis=1)
        total_loc += jnp.sum(jnp.where(pos, abs_diff, 0.0))
        n_pos = jnp.sum(pos).astype(jnp.float32)
        total_pos += n_pos
        s = predicted_scores[i]
        lse = jax.scipy.special.logsumexp(s, axis=1)
        ce = lse - s[jnp.arange(P), label_prior]
        total_ce_pos += jnp.sum(jnp.where(pos, ce, 0.0))
        v = jnp.where(pos, 0.0, ce)
        v_sorted = jnp.sort(v)[::-1]
        hard = jnp.arange(P) < NEG_POS_RATIO * n_pos
        total_ce_hard += jnp.sum(jnp.where(hard, v_sorted, 0.0))
    loc_loss = total_loc / (total_pos * 4.0)
    conf_loss = (total_ce_hard + total_ce_pos) / total_pos
    return conf_loss, ALPHA * loc_loss


if __name__ == "__main__":
    key = jax.random.PRNGKey(0)
    kl, ks, kp, kb, ky = jax.random.split(key, 5)
    # Small shapes consistent with the module: batch=2, 128 priors, 8 classes,
    # 4 ground-truth objects per image (fixed M stands in for the ragged list).
    B, P, C, M = 2, 128, 8, 4

    predicted_locs = jax.random.normal(kl, (B, P, 4), jnp.float32)
    predicted_scores = jax.random.normal(ks, (B, P, C), jnp.float32)

    kp1, kp2 = jax.random.split(kp)
    prior_c = jax.random.uniform(kp1, (P, 2), minval=0.1, maxval=0.9)
    prior_wh = jax.random.uniform(kp2, (P, 2), minval=0.05, maxval=0.3)
    priors_cxcy = jnp.concatenate([prior_c, prior_wh], axis=1)

    kb1, kb2 = jax.random.split(kb)
    box_c = jax.random.uniform(kb1, (B, M, 2), minval=0.25, maxval=0.75)
    box_wh = jax.random.uniform(kb2, (B, M, 2), minval=0.1, maxval=0.4)
    boxes = jnp.concatenate([box_c - box_wh / 2, box_c + box_wh / 2], axis=2)

    labels = jax.random.randint(ky, (B, M), 1, C)   # non-background labels

    conf_loss, loc_loss = multibox_loss(predicted_locs, predicted_scores,
                                        priors_cxcy, boxes, labels)
    jax.block_until_ready((conf_loss, loc_loss))

    conf_ref, loc_ref = multibox_loss_ref(predicted_locs, predicted_scores,
                                          priors_cxcy, boxes, labels)
    assert np.isfinite(float(conf_loss)) and np.isfinite(float(loc_loss))
    assert np.allclose(float(conf_loss), float(conf_ref), rtol=1e-3, atol=1e-3)
    assert np.allclose(float(loc_loss), float(loc_ref), rtol=1e-3, atol=1e-3)
    print("KERNEL_OK")
</pallas_src>

<mosaic_0001>
module attributes {stable_mosaic.version = 11 : i64} {
  func.func @multibox_kernel(%arg0: i32, %arg1: memref<2x4x128xf32, #tpu.memory_space<vmem>>, %arg2: memref<2x8x128xf32, #tpu.memory_space<vmem>>, %arg3: memref<16x128xf32, #tpu.memory_space<vmem>>, %arg4: memref<2x4x4xf32, #tpu.memory_space<vmem>>, %arg5: memref<2x4x1xf32, #tpu.memory_space<vmem>>, %arg6: memref<1x8x128xf32, #tpu.memory_space<vmem>>) attributes {dimension_semantics = [#tpu.dimension_semantics<parallel>], iteration_bounds = array<i64: 1>, scalar_prefetch = 0 : i64, scratch_operands = 0 : i64, tpu.core_type = #tpu.core_type<tc>, window_params = [{transform_indices = @transform_0, window_bounds = array<i64: 2, 4, 128>}, {transform_indices = @transform_1, window_bounds = array<i64: 2, 8, 128>}, {pipeline_mode = #tpu.pipeline_mode<synchronous>, transform_indices = @transform_2, window_bounds = array<i64: 16, 128>}, {transform_indices = @transform_3, window_bounds = array<i64: 2, 4, 4>}, {transform_indices = @transform_4, window_bounds = array<i64: 2, 4, 1>}, {transform_indices = @transform_5, window_bounds = array<i64: 1, 8, 128>}]} {
    %c0 = arith.constant 0 : index
    %c0_0 = arith.constant 0 : index
    %c0_1 = arith.constant 0 : index
    %0 = vector.load %arg1[%c0, %c0_0, %c0_1] : memref<2x4x128xf32, #tpu.memory_space<vmem>>, vector<2x4x128xf32>
    %c0_2 = arith.constant 0 : index
    %c0_3 = arith.constant 0 : index
    %c0_4 = arith.constant 0 : index
    %1 = vector.load %arg2[%c0_2, %c0_3, %c0_4] : memref<2x8x128xf32, #tpu.memory_space<vmem>>, vector<2x8x128xf32>
    %c0_5 = arith.constant 0 : index
    %c0_6 = arith.constant 0 : index
    %2 = vector.load %arg3[%c0_5, %c0_6] : memref<16x128xf32, #tpu.memory_space<vmem>>, vector<16x128xf32>
    %c0_7 = arith.constant 0 : index
    %c0_8 = arith.constant 0 : index
    %c0_9 = arith.constant 0 : index
    %3 = vector.load %arg4[%c0_7, %c0_8, %c0_9] : memref<2x4x4xf32, #tpu.memory_space<vmem>>, vector<2x4x4xf32>
    %c0_10 = arith.constant 0 : index
    %c0_11 = arith.constant 0 : index
    %c0_12 = arith.constant 0 : index
    %4 = vector.load %arg5[%c0_10, %c0_11, %c0_12] : memref<2x4x1xf32, #tpu.memory_space<vmem>>, vector<2x4x1xf32>
    %5 = vector.extract_strided_slice %2 {offsets = [0, 0], sizes = [1, 128], strides = [1, 1]} : vector<16x128xf32> to vector<1x128xf32>
    %6 = vector.extract_strided_slice %2 {offsets = [1, 0], sizes = [1, 128], strides = [1, 1]} : vector<16x128xf32> to vector<1x128xf32>
    %7 = vector.extract_strided_slice %2 {offsets = [2, 0], sizes = [1, 128], strides = [1, 1]} : vector<16x128xf32> to vector<1x128xf32>
    %8 = vector.extract_strided_slice %2 {offsets = [3, 0], sizes = [1, 128], strides = [1, 1]} : vector<16x128xf32> to vector<1x128xf32>
    %9 = vector.extract_strided_slice %2 {offsets = [4, 0], sizes = [1, 128], strides = [1, 1]} : vector<16x128xf32> to vector<1x128xf32>
    %10 = vector.extract_strided_slice %2 {offsets = [5, 0], sizes = [1, 128], strides = [1, 1]} : vector<16x128xf32> to vector<1x128xf32>
    %11 = vector.extract_strided_slice %2 {offsets = [6, 0], sizes = [1, 128], strides = [1, 1]} : vector<16x128xf32> to vector<1x128xf32>
    %12 = vector.extract_strided_slice %2 {offsets = [7, 0], sizes = [1, 128], strides = [1, 1]} : vector<16x128xf32> to vector<1x128xf32>
    %13 = vector.extract_strided_slice %2 {offsets = [8, 0], sizes = [1, 128], strides = [1, 1]} : vector<16x128xf32> to vector<1x128xf32>
    %14 = vector.extract_strided_slice %2 {offsets = [9, 0], sizes = [1, 128], strides = [1, 1]} : vector<16x128xf32> to vector<1x128xf32>
    %15 = vector.extract_strided_slice %2 {offsets = [10, 0], sizes = [1, 128], strides = [1, 1]} : vector<16x128xf32> to vector<1x128xf32>
    %16 = vector.extract_strided_slice %3 {offsets = [0, 0, 0], sizes = [2, 4, 1], strides = [1, 1, 1]} : vector<2x4x4xf32> to vector<2x4x1xf32>
    %17 = vector.extract_strided_slice %3 {offsets = [0, 0, 1], sizes = [2, 4, 1], strides = [1, 1, 1]} : vector<2x4x4xf32> to vector<2x4x1xf32>
    %18 = vector.extract_strided_slice %3 {offsets = [0, 0, 2], sizes = [2, 4, 1], strides = [1, 1, 1]} : vector<2x4x4xf32> to vector<2x4x1xf32>
    %19 = vector.extract_strided_slice %3 {offsets = [0, 0, 3], sizes = [2, 4, 1], strides = [1, 1, 1]} : vector<2x4x4xf32> to vector<2x4x1xf32>
    %20 = vector.shape_cast %9 : vector<1x128xf32> to vector<1x1x128xf32>
    %21 = vector.broadcast %18 : vector<2x4x1xf32> to vector<2x4x128xf32>
    %22 = vector.broadcast %20 : vector<1x1x128xf32> to vector<2x4x128xf32>
    %23 = arith.minimumf %21, %22 : vector<2x4x128xf32>
    %24 = vector.shape_cast %7 : vector<1x128xf32> to vector<1x1x128xf32>
    %25 = vector.broadcast %16 : vector<2x4x1xf32> to vector<2x4x128xf32>
    %26 = vector.broadcast %24 : vector<1x1x128xf32> to vector<2x4x128xf32>
    %27 = arith.maximumf %25, %26 : vector<2x4x128xf32>
    %28 = arith.subf %23, %27 : vector<2x4x128xf32>
    %cst = arith.constant 0.000000e+00 : f32
    %29 = vector.broadcast %cst : f32 to vector<2x4x128xf32>
    %30 = arith.maximumf %28, %29 : vector<2x4x128xf32>
    %31 = vector.shape_cast %10 : vector<1x128xf32> to vector<1x1x128xf32>
    %32 = vector.broadcast %19 : vector<2x4x1xf32> to vector<2x4x128xf32>
    %33 = vector.broadcast %31 : vector<1x1x128xf32> to vector<2x4x128xf32>
    %34 = arith.minimumf %32, %33 : vector<2x4x128xf32>
    %35 = vector.shape_cast %8 : vector<1x128xf32> to vector<1x1x128xf32>
    %36 = vector.broadcast %17 : vector<2x4x1xf32> to vector<2x4x128xf32>
    %37 = vector.broadcast %35 : vector<1x1x128xf32> to vector<2x4x128xf32>
    %38 = arith.maximumf %36, %37 : vector<2x4x128xf32>
    %39 = arith.subf %34, %38 : vector<2x4x128xf32>
    %cst_13 = arith.constant 0.000000e+00 : f32
    %40 = vector.broadcast %cst_13 : f32 to vector<2x4x128xf32>
    %41 = arith.maximumf %39, %40 : vector<2x4x128xf32>
    %42 = arith.mulf %30, %41 : vector<2x4x128xf32>
    %43 = arith.subf %18, %16 : vector<2x4x1xf32>
    %44 = arith.subf %19, %17 : vector<2x4x1xf32>
    %45 = arith.mulf %43, %44 : vector<2x4x1xf32>
    %46 = vector.shape_cast %11 : vector<1x128xf32> to vector<1x1x128xf32>
    %47 = vector.broadcast %45 : vector<2x4x1xf32> to vector<2x4x128xf32>
    %48 = vector.broadcast %46 : vector<1x1x128xf32> to vector<2x4x128xf32>
    %49 = arith.addf %47, %48 : vector<2x4x128xf32>
    %50 = arith.subf %49, %42 : vector<2x4x128xf32>
    %51 = arith.divf %42, %50 : vector<2x4x128xf32>
    %52 = tpu.iota {dimensions = array<i32: 1>} : vector<2x4x128xi32>
    %53 = tpu.iota {dimensions = array<i32: 2>} : vector<2x4x128xi32>
    %cst_14 = arith.constant dense<0xFF800000> : vector<2x128xf32>
    %54 = vector.multi_reduction <maximumf>, %51, %cst_14 [1] : vector<2x4x128xf32> to vector<2x128xf32>
    %55 = vector.shape_cast %54 : vector<2x128xf32> to vector<2x1x128xf32>
    %56 = vector.broadcast %55 : vector<2x1x128xf32> to vector<2x4x128xf32>
    %57 = arith.cmpf oeq, %51, %56 : vector<2x4x128xf32>
    %c4_i32 = arith.constant 4 : i32
    %58 = vector.broadcast %c4_i32 : i32 to vector<2x4x128xi32>
    %59 = arith.select %57, %52, %58 : vector<2x4x128xi1>, vector<2x4x128xi32>
    %cst_15 = arith.constant dense<2147483647> : vector<2x128xi32>
    %60 = vector.multi_reduction <minsi>, %59, %cst_15 [1] : vector<2x4x128xi32> to vector<2x128xi32>
    %61 = vector.shape_cast %60 : vector<2x128xi32> to vector<2x1x128xi32>
    %cst_16 = arith.constant dense<0xFF800000> : vector<2x4xf32>
    %62 = vector.multi_reduction <maximumf>, %51, %cst_16 [2] : vector<2x4x128xf32> to vector<2x4xf32>
    %63 = vector.shape_cast %62 : vector<2x4xf32> to vector<2x4x1xf32>
    %64 = vector.broadcast %63 : vector<2x4x1xf32> to vector<2x4x128xf32>
    %65 = arith.cmpf oeq, %51, %64 : vector<2x4x128xf32>
    %c128_i32 = arith.constant 128 : i32
    %66 = vector.broadcast %c128_i32 : i32 to vector<2x4x128xi32>
    %67 = arith.select %65, %53, %66 : vector<2x4x128xi1>, vector<2x4x128xi32>
    %cst_17 = arith.constant dense<2147483647> : vector<2x4xi32>
    %68 = vector.multi_reduction <minsi>, %67, %cst_17 [2] : vector<2x4x128xi32> to vector<2x4xi32>
    %69 = vector.shape_cast %68 : vector<2x4xi32> to vector<2x4x1xi32>
    %70 = vector.broadcast %69 : vector<2x4x1xi32> to vector<2x4x128xi32>
    %71 = arith.cmpi eq, %70, %53 : vector<2x4x128xi32>
    %c-1_i32 = arith.constant -1 : i32
    %72 = vector.broadcast %c-1_i32 : i32 to vector<2x4x128xi32>
    %73 = arith.select %71, %52, %72 : vector<2x4x128xi1>, vector<2x4x128xi32>
    %cst_18 = arith.constant dense<-2147483648> : vector<2x128xi32>
    %74 = vector.multi_reduction <maxsi>, %73, %cst_18 [1] : vector<2x4x128xi32> to vector<2x128xi32>
    %75 = vector.shape_cast %74 : vector<2x128xi32> to vector<2x1x128xi32>
    %c0_i32 = arith.constant 0 : i32
    %76 = vector.broadcast %c0_i32 : i32 to vector<2x1x128xi32>
    %77 = arith.cmpi sge, %75, %76 : vector<2x1x128xi32>
    %78 = arith.select %77, %75, %61 : vector<2x1x128xi1>, vector<2x1x128xi32>
    %cst_19 = arith.constant 1.000000e+00 : f32
    %79 = vector.broadcast %cst_19 : f32 to vector<2x1x128xf32>
    %80 = arith.select %77, %79, %55 : vector<2x1x128xi1>, vector<2x1x128xf32>
    %81 = vector.broadcast %78 : vector<2x1x128xi32> to vector<2x4x128xi32>
    %82 = arith.cmpi eq, %81, %52 : vector<2x4x128xi32>
    %83 = arith.extui %82 : vector<2x4x128xi1> to vector<2x4x128xi32>
    %84 = arith.sitofp %83 : vector<2x4x128xi32> to vector<2x4x128xf32>
    %85 = vector.broadcast %4 : vector<2x4x1xf32> to vector<2x4x128xf32>
    %86 = arith.mulf %85, %84 : vector<2x4x128xf32>
    %cst_20 = arith.constant dense<0.000000e+00> : vector<2x128xf32>
    %87 = vector.multi_reduction <add>, %86, %cst_20 [1] : vector<2x4x128xf32> to vector<2x128xf32>
    %88 = vector.shape_cast %87 : vector<2x128xf32> to vector<2x1x128xf32>
    %cst_21 = arith.constant 5.000000e-01 : f32
    %89 = vector.broadcast %cst_21 : f32 to vector<2x1x128xf32>
    %90 = arith.cmpf olt, %80, %89 : vector<2x1x128xf32>
    %cst_22 = arith.constant 0.000000e+00 : f32
    %91 = vector.broadcast %cst_22 : f32 to vector<2x1x128xf32>
    %92 = arith.select %90, %91, %88 : vector<2x1x128xi1>, vector<2x1x128xf32>
    %cst_23 = arith.constant 0.000000e+00 : f32
    %93 = vector.broadcast %cst_23 : f32 to vector<2x1x128xf32>
    %94 = arith.cmpf one, %92, %93 : vector<2x1x128xf32>
    %95 = vector.broadcast %16 : vector<2x4x1xf32> to vector<2x4x128xf32>
    %96 = arith.mulf %95, %84 : vector<2x4x128xf32>
    %cst_24 = arith.constant dense<0.000000e+00> : vector<2x128xf32>
    %97 = vector.multi_reduction <add>, %96, %cst_24 [1] : vector<2x4x128xf32> to vector<2x128xf32>
    %98 = vector.shape_cast %97 : vector<2x128xf32> to vector<2x1x128xf32>
    %99 = vector.broadcast %17 : vector<2x4x1xf32> to vector<2x4x128xf32>
    %100 = arith.mulf %99, %84 : vector<2x4x128xf32>
    %cst_25 = arith.constant dense<0.000000e+00> : vector<2x128xf32>
    %101 = vector.multi_reduction <add>, %100, %cst_25 [1] : vector<2x4x128xf32> to vector<2x128xf32>
    %102 = vector.shape_cast %101 : vector<2x128xf32> to vector<2x1x128xf32>
    %103 = vector.broadcast %18 : vector<2x4x1xf32> to vector<2x4x128xf32>
    %104 = arith.mulf %103, %84 : vector<2x4x128xf32>
    %cst_26 = arith.constant dense<0.000000e+00> : vector<2x128xf32>
    %105 = vector.multi_reduction <add>, %104, %cst_26 [1] : vector<2x4x128xf32> to vector<2x128xf32>
    %106 = vector.shape_cast %105 : vector<2x128xf32> to vector<2x1x128xf32>
    %107 = vector.broadcast %19 : vector<2x4x1xf32> to vector<2x4x128xf32>
    %108 = arith.mulf %107, %84 : vector<2x4x128xf32>
    %cst_27 = arith.constant dense<0.000000e+00> : vector<2x128xf32>
    %109 = vector.multi_reduction <add>, %108, %cst_27 [1] : vector<2x4x128xf32> to vector<2x128xf32>
    %110 = vector.shape_cast %109 : vector<2x128xf32> to vector<2x1x128xf32>
    %111 = arith.addf %98, %106 : vector<2x1x128xf32>
    %cst_28 = arith.constant 5.000000e-01 : f32
    %112 = vector.broadcast %cst_28 : f32 to vector<2x1x128xf32>
    %113 = arith.mulf %111, %112 : vector<2x1x128xf32>
    %114 = arith.addf %102, %110 : vector<2x1x128xf32>
    %cst_29 = arith.constant 5.000000e-01 : f32
    %115 = vector.broadcast %cst_29 : f32 to vector<2x1x128xf32>
    %116 = arith.mulf %114, %115 : vector<2x1x128xf32>
    %117 = arith.subf %106, %98 : vector<2x1x128xf32>
    %118 = arith.subf %110, %102 : vector<2x1x128xf32>
    %119 = vector.shape_cast %5 : vector<1x128xf32> to vector<1x1x128xf32>
    %120 = vector.broadcast %119 : vector<1x1x128xf32> to vector<2x1x128xf32>
    %121 = arith.subf %113, %120 : vector<2x1x128xf32>
    %122 = vector.shape_cast %12 : vector<1x128xf32> to vector<1x1x128xf32>
    %123 = vector.broadcast %122 : vector<1x1x128xf32> to vector<2x1x128xf32>
    %124 = arith.mulf %121, %123 : vector<2x1x128xf32>
    %125 = vector.shape_cast %6 : vector<1x128xf32> to vector<1x1x128xf32>
    %126 = vector.broadcast %125 : vector<1x1x128xf32> to vector<2x1x128xf32>
    %127 = arith.subf %116, %126 : vector<2x1x128xf32>
    %128 = vector.shape_cast %13 : vector<1x128xf32> to vector<1x1x128xf32>
    %129 = vector.broadcast %128 : vector<1x1x128xf32> to vector<2x1x128xf32>
    %130 = arith.mulf %127, %129 : vector<2x1x128xf32>
    %131 = vector.shape_cast %14 : vector<1x128xf32> to vector<1x1x128xf32>
    %132 = vector.broadcast %131 : vector<1x1x128xf32> to vector<2x1x128xf32>
    %133 = arith.mulf %117, %132 : vector<2x1x128xf32>
    %134 = math.log %133 : vector<2x1x128xf32>
    %cst_30 = arith.constant 5.000000e+00 : f32
    %135 = vector.broadcast %cst_30 : f32 to vector<2x1x128xf32>
    %136 = arith.mulf %134, %135 : vector<2x1x128xf32>
    %137 = vector.shape_cast %15 : vector<1x128xf32> to vector<1x1x128xf32>
    %138 = vector.broadcast %137 : vector<1x1x128xf32> to vector<2x1x128xf32>
    %139 = arith.mulf %118, %138 : vector<2x1x128xf32>
    %140 = math.log %139 : vector<2x1x128xf32>
    %cst_31 = arith.constant 5.000000e+00 : f32
    %141 = vector.broadcast %cst_31 : f32 to vector<2x1x128xf32>
    %142 = arith.mulf %140, %141 : vector<2x1x128xf32>
    %143 = vector.extract_strided_slice %0 {offsets = [0, 0, 0], sizes = [2, 1, 128], strides = [1, 1, 1]} : vector<2x4x128xf32> to vector<2x1x128xf32>
    %144 = arith.subf %143, %124 : vector<2x1x128xf32>
    %145 = math.absf %144 : vector<2x1x128xf32>
    %146 = vector.extract_strided_slice %0 {offsets = [0, 1, 0], sizes = [2, 1, 128], strides = [1, 1, 1]} : vector<2x4x128xf32> to vector<2x1x128xf32>
    %147 = arith.subf %146, %130 : vector<2x1x128xf32>
    %148 = math.absf %147 : vector<2x1x128xf32>
    %149 = arith.addf %145, %148 : vector<2x1x128xf32>
    %150 = vector.extract_strided_slice %0 {offsets = [0, 2, 0], sizes = [2, 1, 128], strides = [1, 1, 1]} : vector<2x4x128xf32> to vector<2x1x128xf32>
    %151 = arith.subf %150, %136 : vector<2x1x128xf32>
    %152 = math.absf %151 : vector<2x1x128xf32>
    %153 = arith.addf %149, %152 : vector<2x1x128xf32>
    %154 = vector.extract_strided_slice %0 {offsets = [0, 3, 0], sizes = [2, 1, 128], strides = [1, 1, 1]} : vector<2x4x128xf32> to vector<2x1x128xf32>
    %155 = arith.subf %154, %142 : vector<2x1x128xf32>
    %156 = math.absf %155 : vector<2x1x128xf32>
    %157 = arith.addf %153, %156 : vector<2x1x128xf32>
    %cst_32 = arith.constant 0.000000e+00 : f32
    %158 = vector.broadcast %cst_32 : f32 to vector<2x1x128xf32>
    %159 = arith.select %94, %157, %158 : vector<2x1x128xi1>, vector<2x1x128xf32>
    %cst_33 = arith.constant dense<0.000000e+00> : vector<2x1xf32>
    %160 = vector.multi_reduction <add>, %159, %cst_33 [2] : vector<2x1x128xf32> to vector<2x1xf32>
    %161 = vector.shape_cast %160 : vector<2x1xf32> to vector<2x1x1xf32>
    %162 = arith.extui %94 : vector<2x1x128xi1> to vector<2x1x128xi32>
    %163 = arith.sitofp %162 : vector<2x1x128xi32> to vector<2x1x128xf32>
    %cst_34 = arith.constant dense<0.000000e+00> : vector<2x1xf32>
    %164 = vector.multi_reduction <add>, %163, %cst_34 [2] : vector<2x1x128xf32> to vector<2x1xf32>
    %165 = vector.shape_cast %164 : vector<2x1xf32> to vector<2x1x1xf32>
    %cst_35 = arith.constant dense<0xFF800000> : vector<2x128xf32>
    %166 = vector.multi_reduction <maximumf>, %1, %cst_35 [1] : vector<2x8x128xf32> to vector<2x128xf32>
    %167 = vector.shape_cast %166 : vector<2x128xf32> to vector<2x1x128xf32>
    %168 = vector.broadcast %167 : vector<2x1x128xf32> to vector<2x8x128xf32>
    %169 = arith.subf %1, %168 : vector<2x8x128xf32>
    %170 = math.exp %169 : vector<2x8x128xf32>
    %cst_36 = arith.constant dense<0.000000e+00> : vector<2x128xf32>
    %171 = vector.multi_reduction <add>, %170, %cst_36 [1] : vector<2x8x128xf32> to vector<2x128xf32>
    %172 = vector.shape_cast %171 : vector<2x128xf32> to vector<2x1x128xf32>
    %173 = math.log %172 : vector<2x1x128xf32>
    %174 = arith.addf %167, %173 : vector<2x1x128xf32>
    %175 = tpu.iota {dimensions = array<i32: 1>} : vector<2x8x128xi32>
    %176 = arith.fptosi %92 : vector<2x1x128xf32> to vector<2x1x128xi32>
    %177 = vector.broadcast %176 : vector<2x1x128xi32> to vector<2x8x128xi32>
    %178 = arith.cmpi eq, %175, %177 : vector<2x8x128xi32>
    %cst_37 = arith.constant 0.000000e+00 : f32
    %179 = vector.broadcast %cst_37 : f32 to vector<2x8x128xf32>
    %180 = arith.select %178, %1, %179 : vector<2x8x128xi1>, vector<2x8x128xf32>
    %cst_38 = arith.constant dense<0.000000e+00> : vector<2x128xf32>
    %181 = vector.multi_reduction <add>, %180, %cst_38 [1] : vector<2x8x128xf32> to vector<2x128xf32>
    %182 = vector.shape_cast %181 : vector<2x128xf32> to vector<2x1x128xf32>
    %183 = arith.subf %174, %182 : vector<2x1x128xf32>
    %cst_39 = arith.constant 0.000000e+00 : f32
    %184 = vector.broadcast %cst_39 : f32 to vector<2x1x128xf32>
    %185 = arith.select %94, %183, %184 : vector<2x1x128xi1>, vector<2x1x128xf32>
    %cst_40 = arith.constant dense<0.000000e+00> : vector<2x1xf32>
    %186 = vector.multi_reduction <add>, %185, %cst_40 [2] : vector<2x1x128xf32> to vector<2x1xf32>
    %187 = vector.shape_cast %186 : vector<2x1xf32> to vector<2x1x1xf32>
    %cst_41 = arith.constant 0.000000e+00 : f32
    %188 = vector.broadcast %cst_41 : f32 to vector<2x1x128xf32>
    %189 = arith.select %94, %188, %183 : vector<2x1x128xi1>, vector<2x1x128xf32>
    %190 = tpu.iota {dimensions = array<i32: 0>} : vector<128x128xi32>
    %191 = tpu.iota {dimensions = array<i32: 1>} : vector<128x128xi32>
    %192 = arith.cmpi slt, %190, %191 : vector<128x128xi32>
    %cst_42 = arith.constant 1.000000e+00 : bf16
    %193 = vector.broadcast %cst_42 : bf16 to vector<8x128xbf16>
    %cst_43 = arith.constant 0.000000e+00 : f32
    %194 = vector.broadcast %cst_43 : f32 to vector<1x1xf32>
    %195 = vector.extract_strided_slice %189 {offsets = [0, 0, 0], sizes = [1, 1, 128], strides = [1, 1, 1]} : vector<2x1x128xf32> to vector<1x1x128xf32>
    %196 = vector.shape_cast %195 : vector<1x1x128xf32> to vector<1x128xf32>
    %197 = vector.shape_cast %196 : vector<1x128xf32> to vector<1x128xf32>
    %198 = vector.broadcast %197 : vector<1x128xf32> to vector<128x128xf32>
    %199 = tpu.transpose %198, [1, 0] : vector<128x128xf32> -> vector<128x128xf32>
    %200 = arith.cmpf ogt, %199, %198 : vector<128x128xf32>
    %201 = arith.cmpf oeq, %199, %198 : vector<128x128xf32>
    %202 = arith.andi %201, %192 : vector<128x128xi1>
    %203 = arith.ori %200, %202 : vector<128x128xi1>
    %204 = arith.extui %203 : vector<128x128xi1> to vector<128x128xi32>
    %205 = arith.sitofp %204 : vector<128x128xi32> to vector<128x128xf32>
    %206 = arith.truncf %205 : vector<128x128xf32> to vector<128x128xbf16>
    %cst_44 = arith.constant dense<0.000000e+00> : vector<8x128xf32>
    %207 = tpu.matmul %193, %206, %cst_44 {dimension_numbers = #tpu.dot_dimension_numbers<[1], [0], [0], [1], [0, 0, 1, 1], [], []>} : vector<8x128xbf16>, vector<128x128xbf16>, vector<8x128xf32> -> vector<8x128xf32>
    %208 = vector.extract_strided_slice %207 {offsets = [0, 0], sizes = [1, 128], strides = [1, 1]} : vector<8x128xf32> to vector<1x128xf32>
    %209 = vector.extract_strided_slice %165 {offsets = [0, 0, 0], sizes = [1, 1, 1], strides = [1, 1, 1]} : vector<2x1x1xf32> to vector<1x1x1xf32>
    %210 = vector.shape_cast %209 : vector<1x1x1xf32> to vector<1x1xf32>
    %cst_45 = arith.constant 3.000000e+00 : f32
    %211 = vector.broadcast %cst_45 : f32 to vector<1x1xf32>
    %212 = arith.mulf %210, %211 : vector<1x1xf32>
    %213 = vector.broadcast %212 : vector<1x1xf32> to vector<1x128xf32>
    %214 = arith.cmpf olt, %208, %213 : vector<1x128xf32>
    %cst_46 = arith.constant 0.000000e+00 : f32
    %215 = vector.broadcast %cst_46 : f32 to vector<1x128xf32>
    %216 = arith.select %214, %196, %215 : vector<1x128xi1>, vector<1x128xf32>
    %cst_47 = arith.constant dense<0.000000e+00> : vector<1xf32>
    %217 = vector.multi_reduction <add>, %216, %cst_47 [1] : vector<1x128xf32> to vector<1xf32>
    %218 = vector.shape_cast %217 : vector<1xf32> to vector<1x1xf32>
    %219 = arith.addf %194, %218 : vector<1x1xf32>
    %220 = vector.extract_strided_slice %161 {offsets = [0, 0, 0], sizes = [1, 1, 1], strides = [1, 1, 1]} : vector<2x1x1xf32> to vector<1x1x1xf32>
    %221 = vector.shape_cast %220 : vector<1x1x1xf32> to vector<1x1xf32>
    %222 = arith.addf %194, %221 : vector<1x1xf32>
    %223 = vector.extract_strided_slice %165 {offsets = [0, 0, 0], sizes = [1, 1, 1], strides = [1, 1, 1]} : vector<2x1x1xf32> to vector<1x1x1xf32>
    %224 = vector.shape_cast %223 : vector<1x1x1xf32> to vector<1x1xf32>
    %225 = arith.addf %194, %224 : vector<1x1xf32>
    %226 = vector.extract_strided_slice %187 {offsets = [0, 0, 0], sizes = [1, 1, 1], strides = [1, 1, 1]} : vector<2x1x1xf32> to vector<1x1x1xf32>
    %227 = vector.shape_cast %226 : vector<1x1x1xf32> to vector<1x1xf32>
    %228 = arith.addf %194, %227 : vector<1x1xf32>
    %229 = vector.extract_strided_slice %189 {offsets = [1, 0, 0], sizes = [1, 1, 128], strides = [1, 1, 1]} : vector<2x1x128xf32> to vector<1x1x128xf32>
    %230 = vector.shape_cast %229 : vector<1x1x128xf32> to vector<1x128xf32>
    %231 = vector.shape_cast %230 : vector<1x128xf32> to vector<1x128xf32>
    %232 = vector.broadcast %231 : vector<1x128xf32> to vector<128x128xf32>
    %233 = tpu.transpose %232, [1, 0] : vector<128x128xf32> -> vector<128x128xf32>
    %234 = arith.cmpf ogt, %233, %232 : vector<128x128xf32>
    %235 = arith.cmpf oeq, %233, %232 : vector<128x128xf32>
    %236 = arith.andi %235, %192 : vector<128x128xi1>
    %237 = arith.ori %234, %236 : vector<128x128xi1>
    %238 = arith.extui %237 : vector<128x128xi1> to vector<128x128xi32>
    %239 = arith.sitofp %238 : vector<128x128xi32> to vector<128x128xf32>
    %240 = arith.truncf %239 : vector<128x128xf32> to vector<128x128xbf16>
    %cst_48 = arith.constant dense<0.000000e+00> : vector<8x128xf32>
    %241 = tpu.matmul %193, %240, %cst_48 {dimension_numbers = #tpu.dot_dimension_numbers<[1], [0], [0], [1], [0, 0, 1, 1], [], []>} : vector<8x128xbf16>, vector<128x128xbf16>, vector<8x128xf32> -> vector<8x128xf32>
    %242 = vector.extract_strided_slice %241 {offsets = [0, 0], sizes = [1, 128], strides = [1, 1]} : vector<8x128xf32> to vector<1x128xf32>
    %243 = vector.extract_strided_slice %165 {offsets = [1, 0, 0], sizes = [1, 1, 1], strides = [1, 1, 1]} : vector<2x1x1xf32> to vector<1x1x1xf32>
    %244 = vector.shape_cast %243 : vector<1x1x1xf32> to vector<1x1xf32>
    %cst_49 = arith.constant 3.000000e+00 : f32
    %245 = vector.broadcast %cst_49 : f32 to vector<1x1xf32>
    %246 = arith.mulf %244, %245 : vector<1x1xf32>
    %247 = vector.broadcast %246 : vector<1x1xf32> to vector<1x128xf32>
    %248 = arith.cmpf olt, %242, %247 : vector<1x128xf32>
    %cst_50 = arith.constant 0.000000e+00 : f32
    %249 = vector.broadcast %cst_50 : f32 to vector<1x128xf32>
    %250 = arith.select %248, %230, %249 : vector<1x128xi1>, vector<1x128xf32>
    %cst_51 = arith.constant dense<0.000000e+00> : vector<1xf32>
    %251 = vector.multi_reduction <add>, %250, %cst_51 [1] : vector<1x128xf32> to vector<1xf32>
    %252 = vector.shape_cast %251 : vector<1xf32> to vector<1x1xf32>
    %253 = arith.addf %219, %252 : vector<1x1xf32>
    %254 = vector.extract_strided_slice %161 {offsets = [1, 0, 0], sizes = [1, 1, 1], strides = [1, 1, 1]} : vector<2x1x1xf32> to vector<1x1x1xf32>
    %255 = vector.shape_cast %254 : vector<1x1x1xf32> to vector<1x1xf32>
    %256 = arith.addf %222, %255 : vector<1x1xf32>
    %257 = vector.extract_strided_slice %165 {offsets = [1, 0, 0], sizes = [1, 1, 1], strides = [1, 1, 1]} : vector<2x1x1xf32> to vector<1x1x1xf32>
    %258 = vector.shape_cast %257 : vector<1x1x1xf32> to vector<1x1xf32>
    %259 = arith.addf %225, %258 : vector<1x1xf32>
    %260 = vector.extract_strided_slice %187 {offsets = [1, 0, 0], sizes = [1, 1, 1], strides = [1, 1, 1]} : vector<2x1x1xf32> to vector<1x1x1xf32>
    %261 = vector.shape_cast %260 : vector<1x1x1xf32> to vector<1x1xf32>
    %262 = arith.addf %228, %261 : vector<1x1xf32>
    %cst_52 = arith.constant 0.000000e+00 : f32
    %263 = vector.broadcast %cst_52 : f32 to vector<1x128xf32>
    %264 = vector.broadcast %256 : vector<1x1xf32> to vector<1x128xf32>
    %265 = arith.addf %263, %264 : vector<1x128xf32>
    %c0_53 = arith.constant 0 : index
    %c0_54 = arith.constant 0 : index
    %c0_55 = arith.constant 0 : index
    %266 = vector.load %arg6[%c0_53, %c0_54, %c0_55] : memref<1x8x128xf32, #tpu.memory_space<vmem>>, vector<1x1x128xf32>
    %267 = vector.shape_cast %266 : vector<1x1x128xf32> to vector<1x128xf32>
    %268 = vector.shape_cast %265 : vector<1x128xf32> to vector<1x1x128xf32>
    tpu.vector_store %arg6[%c0_53, %c0_54, %c0_55], %268 {strides = array<i32>} : memref<1x8x128xf32, #tpu.memory_space<vmem>>, vector<1x1x128xf32>,
    %269 = vector.broadcast %259 : vector<1x1xf32> to vector<1x128xf32>
    %270 = arith.addf %263, %269 : vector<1x128xf32>
    %c0_56 = arith.constant 0 : index
    %c1 = arith.constant 1 : index
    %c0_57 = arith.constant 0 : index
    %271 = vector.load %arg6[%c0_56, %c1, %c0_57] : memref<1x8x128xf32, #tpu.memory_space<vmem>>, vector<1x1x128xf32>
    %272 = vector.shape_cast %271 : vector<1x1x128xf32> to vector<1x128xf32>
    %273 = vector.shape_cast %270 : vector<1x128xf32> to vector<1x1x128xf32>
    tpu.vector_store %arg6[%c0_56, %c1, %c0_57], %273 {strides = array<i32>} : memref<1x8x128xf32, #tpu.memory_space<vmem>>, vector<1x1x128xf32>,
    %274 = vector.broadcast %262 : vector<1x1xf32> to vector<1x128xf32>
    %275 = arith.addf %263, %274 : vector<1x128xf32>
    %c0_58 = arith.constant 0 : index
    %c2 = arith.constant 2 : index
    %c0_59 = arith.constant 0 : index
    %276 = vector.load %arg6[%c0_58, %c2, %c0_59] : memref<1x8x128xf32, #tpu.memory_space<vmem>>, vector<1x1x128xf32>
    %277 = vector.shape_cast %276 : vector<1x1x128xf32> to vector<1x128xf32>
    %278 = vector.shape_cast %275 : vector<1x128xf32> to vector<1x1x128xf32>
    tpu.vector_store %arg6[%c0_58, %c2, %c0_59], %278 {strides = array<i32>} : memref<1x8x128xf32, #tpu.memory_space<vmem>>, vector<1x1x128xf32>,
    %279 = vector.broadcast %253 : vector<1x1xf32> to vector<1x128xf32>
    %280 = arith.addf %263, %279 : vector<1x128xf32>
    %c0_60 = arith.constant 0 : index
    %c3 = arith.constant 3 : index
    %c0_61 = arith.constant 0 : index
    %281 = vector.load %arg6[%c0_60, %c3, %c0_61] : memref<1x8x128xf32, #tpu.memory_space<vmem>>, vector<1x1x128xf32>
    %282 = vector.shape_cast %281 : vector<1x1x128xf32> to vector<1x128xf32>
    %283 = vector.shape_cast %280 : vector<1x128xf32> to vector<1x1x128xf32>
    tpu.vector_store %arg6[%c0_60, %c3, %c0_61], %283 {strides = array<i32>} : memref<1x8x128xf32, #tpu.memory_space<vmem>>, vector<1x1x128xf32>,
    %cst_62 = arith.constant 0.000000e+00 : f32
    %284 = vector.broadcast %cst_62 : f32 to vector<4x128xf32>
    %c0_63 = arith.constant 0 : index
    %c4 = arith.constant 4 : index
    %c0_64 = arith.constant 0 : index
    %285 = vector.load %arg6[%c0_63, %c4, %c0_64] : memref<1x8x128xf32, #tpu.memory_space<vmem>>, vector<1x4x128xf32>
    %286 = vector.shape_cast %285 : vector<1x4x128xf32> to vector<4x128xf32>
    %287 = vector.shape_cast %284 : vector<4x128xf32> to vector<1x4x128xf32>
    tpu.vector_store %arg6[%c0_63, %c4, %c0_64], %287 {strides = array<i32>} : memref<1x8x128xf32, #tpu.memory_space<vmem>>, vector<1x4x128xf32>,
    return
  }
  func.func @transform_0(%arg0: i32) -> (i32, i32, i32) {
    %c0_i32 = arith.constant 0 : i32
    %c0_i32_0 = arith.constant 0 : i32
    %c0_i32_1 = arith.constant 0 : i32
    return %arg0, %c0_i32, %c0_i32_0 : i32, i32, i32
  }
  func.func @transform_1(%arg0: i32) -> (i32, i32, i32) {
    %c0_i32 = arith.constant 0 : i32
    %c0_i32_0 = arith.constant 0 : i32
    %c0_i32_1 = arith.constant 0 : i32
    return %arg0, %c0_i32, %c0_i32_0 : i32, i32, i32
  }
  func.func @transform_2(%arg0: i32) -> (i32, i32) {
    %c0_i32 = arith.constant 0 : i32
    %c0_i32_0 = arith.constant 0 : i32
    %c0_i32_1 = arith.constant 0 : i32
    return %c0_i32, %c0_i32_0 : i32, i32
  }
  func.func @transform_3(%arg0: i32) -> (i32, i32, i32) {
    %c0_i32 = arith.constant 0 : i32
    %c0_i32_0 = arith.constant 0 : i32
    %c0_i32_1 = arith.constant 0 : i32
    return %arg0, %c0_i32, %c0_i32_0 : i32, i32, i32
  }
  func.func @transform_4(%arg0: i32) -> (i32, i32, i32) {
    %c0_i32 = arith.constant 0 : i32
    %c0_i32_0 = arith.constant 0 : i32
    %c0_i32_1 = arith.constant 0 : i32
    return %arg0, %c0_i32, %c0_i32_0 : i32, i32, i32
  }
  func.func @transform_5(%arg0: i32) -> (i32, i32, i32) {
    %c0_i32 = arith.constant 0 : i32
    %c0_i32_0 = arith.constant 0 : i32
    %c0_i32_1 = arith.constant 0 : i32
    return %arg0, %c0_i32, %c0_i32_0 : i32, i32, i32
  }
}

</mosaic_0001>

<bundles_post_ra>
// kernel: tpu_custom_call.1
= control target key start
LH: loop header
LB: loop body
LE: loop exit
PB: predicated region body
PF: predicated region fallthrough
CT: control target
= control target key end

     0   :  { %10 = vsyncpa [#allocation3], 0  ;;  %s2355_s0 = inlined_call_operand.vmem [shape: f32[2,4,128], index: 0, kind: input, shape index: {}]   ;;  %s2356_s1 = inlined_call_operand.hbm [shape: f32[2,8,128], index: 1, kind: input, shape index: {}]   ;;  %s2357_s2 = inlined_call_operand.hbm [shape: f32[16,128], index: 2, kind: input, shape index: {}]   ;;  %s2358_s3 = inlined_call_operand.hbm [shape: f32[2,4,4], index: 3, kind: input, shape index: {}]   ;;  %s2359_s4 = inlined_call_operand.vmem [shape: f32[2,4,1], index: 4, kind: input, shape index: {}]   ;;  %s2360_s5 = inlined_call_operand.hbm [shape: f32[1,8,128], index: 5, kind: output, shape index: {}]  }
   0x1   :  { %11 = vsyncpa [#allocation6], 0 }
   0x2   :  { %12 = vsyncpa [#allocation4], 0  ;;  %s1263_s18 = smov [#allocation5]   ;;  %s1264_s20 = smov [#allocation2]  }
   0x3   :  { %s32_s19 = sshll.u32 %s1263_s18, 4  ;;  %s20_s21 = sshll.u32 %s1264_s20, 4  ;;  %s33_s19 = int_to_ptr.vmem [resolvable:$true] %s32_s19  ;;  %s21_s21 = int_to_ptr.vmem [resolvable:$true] %s20_s21 }
   0x4   :  { %s1185_s22 = scalar_lea.vmem %s33_s19, 256  ;;  %p1190_p1 = scmp.lt.s32.totalorder %s33_s19, %s33_s19 }
   0x5   :  { %p1186_p0 = scmp.ne.s32.totalorder %s33_s19, %s1185_s22  ;;  %p1191_p2 = scmp.lt.s32.totalorder %s1185_s22, %s1185_s22 }
   0x7   :  { %p1192_p3 = por %p1191_p2, %p1190_p1 }
   0x9   :  { %p1193_p4 = pnand %p1192_p3, %p1186_p0 }
   0xb   :  { %1196 = shalt.err (!%p1193_p4)
}
   0xc   :  { %s1265_s23 = smov 128   ;;  %s1266_s24 = smov 8  }
   0xd   :  { %38 = dma.hbm_to_vmem [thread:$0]  %s2357_s2, 256, %s33_s19, [#allocation6], %s1265_s23, %s1265_s23, %s1266_s24  }
   0xe   :  { %s1205_s27 = scalar_lea.vmem %s21_s21, 256  ;;  %p1210_p6 = scmp.lt.s32.totalorder %s21_s21, %s21_s21 }
   0xf   :  { %p1206_p5 = scmp.ne.s32.totalorder %s21_s21, %s1205_s27  ;;  %p1211_p7 = scmp.lt.s32.totalorder %s1205_s27, %s1205_s27 }
  0x11   :  { %p1212_p8 = por %p1211_p7, %p1210_p6 }
  0x13   :  { %p1213_p9 = pnand %p1212_p8, %p1206_p5 }
  0x15   :  { %1216 = shalt.err (!%p1213_p9)
}
  0x16   :  { %26 = dma.hbm_to_vmem [thread:$0]  %s2356_s1, 256, %s21_s21, [#allocation3], %s1265_s23, %s1265_s23, %s1266_s24  }
  0x17   :  { %s1267_s30 = smov [#allocation7]  }
  0x18   :  { %s44_s6 = sshll.u32 %s1267_s30, 4  ;;  %s45_s6 = int_to_ptr.vmem [resolvable:$true] %s44_s6 }
  0x19   :  { %s1225_s7 = scalar_lea.vmem %s45_s6, 128  ;;  %p1230_p11 = scmp.lt.s32.totalorder %s45_s6, %s45_s6 }
  0x1a   :  { %p1226_p10 = scmp.ne.s32.totalorder %s45_s6, %s1225_s7  ;;  %p1231_p12 = scmp.lt.s32.totalorder %s1225_s7, %s1225_s7 }
  0x1c   :  { %p1232_p13 = por %p1231_p12, %p1230_p11 }
  0x1e   :  { %p1233_p0 = pnand %p1232_p13, %p1226_p10 }
  0x20   :  { %1236 = shalt.err (!%p1233_p0)
}
  0x21   :  { %s1268_s2 = smov 64   ;;  %s1269_s8 = smov 4  }
  0x22   :  { %50 = dma.hbm_to_vmem [thread:$0]  %s2358_s3, 128, %s45_s6, [#allocation6], %s1268_s2, %s1268_s2, %s1269_s8  }
  0x23   :  { %1257 = dma.done.wait [#allocation3], 256  }
  0x24   :  { %1258 = vsyncadd [#allocation3], 4294967040 }
  0x25   :  { %1259 = dma.done.wait [#allocation6], 384  }
  0x26   :  { %1260 = vsyncadd [#allocation6], 4294966912  ;;  %v1270_v0 = vmov 2   ;;  %v70_v1 = vld [vmem:[#allocation7] sm:$0xf]  ;;  %s1271_s1 = smov 2   ;;  %v84_v17 = vlaneseq }
  0x27   :  { %1147 = vset.pattern.permute.xlu1 %v1270_v0  ;;  %1146 = vset.pattern.permute.xlu0 %v1270_v0  ;;  %v71_v2 = vld [vmem:[#allocation7 + $0x4] sm:$0xf]  ;;  %v1272_v3 = vmov 0   ;;  %v1273_v4 = vmov 1   ;;  %s1274_s3 = smov 127   ;;  %v1275_v9 = vmov 3  }
  0x28   :  { %142 = vrot.lane.b32.xlu0 %v70_v1, %s1271_s1  ;;  %v1328_v19 = vshrl.u32 %v84_v17, 7  ;;  %v1336_v25 = vld [vmem:[#allocation5] sm:$0xff]  ;;  %vm186_vm0 = vcmask 1043456  }
  0x2a   :  { %v86_v21 = vsub.s32 4, %v1328_v19  ;;  %v100_v22 = vsub.s32 2, %v1328_v19  ;;  %v118_v23 = vsub.s32 5, %v1328_v19  ;;  %v132_v24 = vsub.s32 3, %v1328_v19 }
  0x2b   :  { %v172_v39 = vsub.s32 6, %v1328_v19 }
  0x2c   :  { %144 = vrot.lane.b32.xlu0 %v71_v2, %s1271_s1  ;;  %v87_v28 = vrot.slane %v1336_v25, %v86_v21  ;;  %v101_v29 = vrot.slane %v1336_v25, %v100_v22  ;;  %v119_v30 = vrot.slane %v1336_v25, %v118_v23  ;;  %v133_v31 = vrot.slane %v1336_v25, %v132_v24 }
  0x2d   :  { %v173_v44 = vrot.slane %v1336_v25, %v172_v39 }
  0x30   :  { %76 = vperm.xlu0 %1146, %v70_v1  }
  0x34   :  { %1149 = vset.pattern.permute.xlu0 %v1272_v3 }
  0x35   :  { %95 = vperm.xlu0 %1149, %v71_v2  }
  0x39   :  { %1151 = vset.pattern.permute.xlu0 %v1273_v4 }
  0x3a   :  { %123 = vperm.xlu0 %1151, %v70_v1  }
  0x3e   :  { %1154 = vset.pattern.permute.xlu0 %v1270_v0 }
  0x9a   :  { %v143_v5 = vpop.permute.xlu0 %142 }
  0x9b   :  { %v148_v6 = vsub.f32 %v70_v1, %v143_v5 }
  0x9d   :  { %152 = vrot.lane.b32.xlu1 %v148_v6, %s1274_s3 }
  0x9e   :  { %v145_v7 = vpop.permute.xlu0 %144 }
  0x9f   :  { %v149_v8 = vsub.f32 %v71_v2, %v145_v7 }
  0xa1   :  { %154 = vrot.lane.b32.xlu1 %v149_v8, %s1274_s3 }
  0xa5   :  { %81 = vperm.xlu1 %1147, %v71_v2  }
  0xa9   :  { %1148 = vset.pattern.permute.xlu1 %v1272_v3 }
  0xaa   :  { %91 = vperm.xlu1 %1148, %v70_v1  }
  0xab   :  { %v1324_v16 = vpop.permute.xlu0 %76 }
  0xac   :  { %v88_v34 = vmin.f32 %v1324_v16, %v87_v28 }
  0xae   :  { %1150 = vset.pattern.permute.xlu1 %v1275_v9 }
  0xaf   :  { %109 = vperm.xlu1 %1150, %v70_v1   ;;  %v1366_v1 = vand.u32 127, %v84_v17 }
  0xb0   :  { %v1330_v20 = vpop.permute.xlu0 %95 }
  0xb1   :  { %v103_v38 = vmax.f32 %v1330_v20, %v101_v29 }
  0xb3   :  { %113 = vperm.xlu1 %1150, %v71_v2  }
  0xb5   :  { %v1340_v27 = vpop.permute.xlu0 %123 }
  0xb6   :  { %v134_v35 = vmax.f32 %v1340_v27, %v133_v31 }
  0xb7   :  { %1152 = vset.pattern.permute.xlu1 %v1273_v4 }
  0xb8   :  { %127 = vperm.xlu1 %1152, %v71_v2  }
  0xbc   :  { %1153 = vset.pattern.permute.xlu1 %v1270_v0 }
 0x10f   :  { %v153_v10 = vpop.permute.xlu1 %152 }
 0x110   :  { %v158_v11 = vmul.f32 %v153_v10, %v148_v6 }
 0x112   :  { %162 = vperm.xlu1 %1153, %v158_v11  }
 0x113   :  { %v155_v12 = vpop.permute.xlu1 %154 }
 0x114   :  { %v159_v13 = vmul.f32 %v155_v12, %v149_v8 }
 0x116   :  { %167 = vperm.xlu0 %1154, %v159_v13   ;;  %1155 = vset.pattern.permute.xlu1 %v1272_v3 }
 0x11a   :  { %1156 = vset.pattern.permute.xlu0 %v1272_v3 }
 0x120   :  { %v1320_v14 = vpop.permute.xlu1 %81 }
 0x121   :  { %v89_v37 = vmin.f32 %v1320_v14, %v87_v28 }
 0x123   :  { %v105_v47 = vsub.f32 %v89_v37, %v103_v38 }
 0x125   :  { %v1322_v15 = vpop.permute.xlu1 %91  ;;  %v107_v51 = vmax.f32 %v105_v47, 0.0 }
 0x126   :  { %v102_v32 = vmax.f32 %v1322_v15, %v101_v29  ;;  %v72_v29 = vld [vmem:[%s2359_s4] sm:$0xf] }
 0x128   :  { %v104_v41 = vsub.f32 %v88_v34, %v102_v32  ;;  %v1389_v32 = vld [vmem:[#allocation2] sm:$0xff] }
 0x129   :  { %v506_v34 = vrot.slane %v1389_v32, 4 }
 0x12a   :  { %v1326_v18 = vpop.permute.xlu1 %109  ;;  %v106_v45 = vmax.f32 %v104_v41, 0.0 }
 0x12b   :  { %v120_v33 = vmin.f32 %v1326_v18, %v119_v30  ;;  %v507_v38 = vmax.f32 %v1389_v32, %v506_v34 }
 0x12d   :  { %v136_v43 = vsub.f32 %v120_v33, %v134_v35  ;;  %v1391_v33 = vld [vmem:[#allocation2 + $0x8] sm:$0xff] }
 0x12e   :  { %v1338_v26 = vpop.permute.xlu1 %113  ;;  %v512_v37 = vrot.slane %v1391_v33, 4 }
 0x12f   :  { %v121_v40 = vmin.f32 %v1338_v26, %v119_v30  ;;  %v138_v48 = vmax.f32 %v136_v43, 0.0  ;;  %v73_v30 = vld [vmem:[%s2359_s4 + $0x4] sm:$0xf] }
 0x130   :  { %v513_v41 = vmax.f32 %v1391_v33, %v512_v37 }
 0x131   :  { %v140_v52 = vmul.f32 %v138_v48, %v106_v45 }
 0x132   :  { %v514_v45 = vrot.slane %v513_v41, 2 }
 0x133   :  { %v1350_v36 = vpop.permute.xlu1 %127 }
 0x134   :  { %v135_v42 = vmax.f32 %v1350_v36, %v133_v31  ;;  %v1276_v31 = vmov 0.0  }
 0x135   :  { %981 = vst [vmem:[#allocation8 + $0x4] sm:$0xf] %v1276_v31  ;;  %1084 = vmatprep.subr.bf16.mxu0 %v1276_v31  ;;  %1104 = vmatprep.subr.bf16.mxu1 %v1276_v31 }
 0x136   :  { %v137_v46 = vsub.f32 %v121_v40, %v135_v42  ;;  %v508_v42 = vrot.slane %v507_v38, 2 }
 0x138   :  { %v139_v50 = vmax.f32 %v137_v46, 0.0  ;;  %v509_v46 = vmax.f32 %v507_v38, %v508_v42 }
 0x13a   :  { %v141_v56 = vmul.f32 %v139_v50, %v107_v51  ;;  %v510_v50 = vrot.slane %v509_v46, 1 }
 0x18d   :  { %v163_v49 = vpop.permute.xlu1 %162 }
 0x18e   :  { %v174_v53 = vadd.f32 %v173_v44, %v163_v49  ;;  %v515_v49 = vmax.f32 %v513_v41, %v514_v45 }
 0x190   :  { %v176_v54 = vsub.f32 %v174_v53, %v140_v52  ;;  %v516_v53 = vrot.slane %v515_v49, 1 }
 0x191   :  { %v168_v55 = vpop.permute.xlu0 %167 }
 0x192   :  { %1157 = vrcp.f32 %v176_v54  ;;  %v175_v57 = vadd.f32 %v173_v44, %v168_v55  ;;  %v1397_v54 = vmax.f32 %v509_v46, %v510_v50 }
 0x194   :  { %v177_v58 = vsub.f32 %v175_v57, %v141_v56  ;;  %v1401_v57 = vmax.f32 %v515_v49, %v516_v53 }
 0x196   :  { %1159 = vrcp.f32 %v177_v58  ;;  %v518_v58 = vsub.f32 %v1389_v32, %v1397_v54 }
 0x19f   :  { %v1158_v59 = vpop.eup %1157 }
 0x1a0   :  { %v1358_v60 = vmul.f32 %v1158_v59, %v140_v52 }
 0x1a2   :  { %v187_v61 = vsel %vm186_vm0, %v1358_v60, -inf }
 0x1a3   :  { %v1160_v62 = vpop.eup %1159  ;;  %225 = vmax.xlane.f32.xlu1 %v187_v61  ;;  %v188_v35 = vrot.slane %v187_v61, 4 }
 0x1a4   :  { %v1362_v63 = vmul.f32 %v1160_v62, %v141_v56 }
 0x1a5   :  { %v189_v39 = vmax.f32 %v187_v61, %v188_v35  ;;  %v519_v61 = vsub.f32 %v1391_v33, %v1401_v57 }
 0x1a6   :  { %v194_v0 = vsel %vm186_vm0, %v1362_v63, -inf }
 0x1a7   :  { %227 = vmax.xlane.f32.xlu0 %v194_v0  ;;  %v195_v40 = vrot.slane %v194_v0, 4  ;;  %v190_v43 = vrot.slane %v189_v39, 2 }
 0x1a9   :  { %v196_v44 = vmax.f32 %v194_v0, %v195_v40  ;;  %v191_v47 = vmax.f32 %v189_v39, %v190_v43  ;;  %v520_v0 = vmul.f32 1.442695, %v518_v58 }
 0x1ab   :  { %v197_v48 = vrot.slane %v196_v44, 2  ;;  %v192_v51 = vrot.slane %v191_v47, 1  ;;  %1161 = vpow2.f32 %v520_v0 }
 0x1ad   :  { %v198_v52 = vmax.f32 %v196_v44, %v197_v48  ;;  %v1399_v55 = vmax.f32 %v191_v47, %v192_v51 }
 0x1af   :  { %v199_v56 = vrot.slane %v198_v52, 1  ;;  %vm201_vm5 = vcmp.eq.f32.partialorder %v1358_v60, %v1399_v55 }
 0x1b0   :  { %v203_v62 = vsel %vm201_vm5, %v1328_v19, 4 }
 0x1b1   :  { %v1407_v59 = vmax.f32 %v198_v52, %v199_v56 }
 0x1b3   :  { %vm202_vm6 = vcmp.eq.f32.partialorder %v1362_v63, %v1407_v59 }
 0x22c   :  { %v226_v2 = vpop.xlane.xlu1 %225 }
 0x22d   :  { %vm229_vm1 = vcmp.eq.f32.partialorder %v1358_v60, %v226_v2  ;;  %v522_v2 = vmul.f32 1.442695, %v519_v61 }
 0x22e   :  { %v231_v3 = vsel %vm229_vm1, %v1366_v1, 128 }
 0x22f   :  { %v233_v4 = vsel %vm186_vm0, %v231_v3, 2147483647  ;;  %v205_v3 = vsel %vm186_vm0, %v203_v62, 2147483647  ;;  %1163 = vpow2.f32 %v522_v2 }
 0x230   :  { %v228_v5 = vpop.xlane.xlu0 %227  ;;  %v235_v6 = vshra.s32 %v233_v4, 16  ;;  %v234_v12 = vand.u32 65535, %v233_v4  ;;  %v204_v4 = vsel %vm202_vm6, %v1328_v19, 4 }
 0x231   :  { %vm230_vm2 = vcmp.eq.f32.partialorder %v1362_v63, %v228_v5  ;;  %v206_v5 = vrot.slane %v205_v3, 4  ;;  %v215_v60 = vsel %vm186_vm0, %v204_v4, 2147483647 }
 0x232   :  { %v232_v7 = vsel %vm230_vm2, %v1366_v1, 128  ;;  %v237_v8 = vcvt.s32.f32 %v235_v6  ;;  %v236_v17 = vcvt.s32.f32 %v234_v12  ;;  %v216_v6 = vrot.slane %v215_v60, 4 }
 0x233   :  { %v248_v9 = vsel %vm186_vm0, %v232_v7, 2147483647  ;;  %vm207_vm7 = vcmp.lt.s32.totalorder %v205_v3, %v206_v5 }
 0x234   :  { %238 = vmin.xlane.f32.xlu1 %v237_v8  ;;  %v250_v10 = vshra.s32 %v248_v9, 16  ;;  %v249_v21 = vand.u32 65535, %v248_v9  ;;  %vm217_vm8 = vcmp.lt.s32.totalorder %v215_v60, %v216_v6 }
 0x236   :  { %v252_v11 = vcvt.s32.f32 %v250_v10  ;;  %v251_v24 = vcvt.s32.f32 %v249_v21  ;;  %v218_v21 = vsel %vm217_vm8, %v215_v60, %v216_v6 }
 0x237   :  { %v219_v34 = vrot.slane %v218_v21, 2 }
 0x238   :  { %253 = vmin.xlane.f32.xlu0 %v252_v11 }
 0x239   :  { %vm220_vm13 = vcmp.lt.s32.totalorder %v218_v21, %v219_v34 }
 0x23a   :  { %v221_v49 = vsel %vm220_vm13, %v218_v21, %v219_v34 }
 0x23b   :  { %v222_v61 = vrot.slane %v221_v49, 1 }
 0x2bd   :  { %v1374_v13 = vpop.xlane.xlu1 %238 }
 0x2be   :  { %vm240_vm3 = vcmp.eq.f32.partialorder %v237_v8, %v1374_v13  ;;  %v245_v7 = vcvt.f32.s32 %v1374_v13  ;;  %v208_v8 = vsel %vm207_vm7, %v205_v3, %v206_v5  ;;  %vm223_vm7 = vcmp.lt.s32.totalorder %v221_v49, %v222_v61 }
 0x2bf   :  { %v241_v22 = vsel %vm240_vm3, %v236_v17, inf  ;;  %v209_v12 = vrot.slane %v208_v8, 2  ;;  %v1162_v17 = vpop.eup %1161 }
 0x2c0   :  { %242 = vmin.xlane.f32.xlu1 %v241_v22  ;;  %v246_v10 = vshll.u32 %v245_v7, 16  ;;  %v524_v38 = vrot.slane %v1162_v17, 4 }
 0x2c1   :  { %v1377_v23 = vpop.xlane.xlu0 %253  ;;  %vm210_vm10 = vcmp.lt.s32.totalorder %v208_v8, %v209_v12 }
 0x2c2   :  { %vm255_vm4 = vcmp.eq.f32.partialorder %v252_v11, %v1377_v23  ;;  %v260_v63 = vcvt.f32.s32 %v1377_v23  ;;  %v211_v41 = vsel %vm210_vm10, %v208_v8, %v209_v12  ;;  %v525_v44 = vadd.f32 %v1162_v17, %v524_v38 }
 0x2c3   :  { %v256_v28 = vsel %vm255_vm4, %v251_v24, inf  ;;  %v1164_v24 = vpop.eup %1163  ;;  %v212_v48 = vrot.slane %v211_v41, 1 }
 0x2c4   :  { %257 = vmin.xlane.f32.xlu0 %v256_v28  ;;  %v530_v23 = vrot.slane %v1164_v24, 4  ;;  %v526_v52 = vrot.slane %v525_v44, 2 }
 0x2c5   :  { %vm213_vm1 = vcmp.lt.s32.totalorder %v211_v41, %v212_v48 }
 0x2c6   :  { %v531_v45 = vadd.f32 %v1164_v24, %v530_v23  ;;  %v527_v2 = vadd.f32 %v526_v52, %v525_v44  ;;  %v214_v5 = vsel %vm213_vm1, %v211_v41, %v212_v48  ;;  %vm2361_vm1 = vcmask 1040384  }
 0x2c8   :  { %v532_v53 = vrot.slane %v531_v45, 2  ;;  %v528_v8 = vrot.slane %v527_v2, 1 }
 0x2ca   :  { %v533_v3 = vadd.f32 %v532_v53, %v531_v45 }
 0x2d1   :  { %301 = vperm.xlu1 %1155, %v72_v29   ;;  %v261_v29 = vshll.u32 %v260_v63, 16 }
 0x2da   :  { %306 = vperm.xlu0 %1156, %v73_v30  }
 0x349   :  { %v243_v9 = vpop.xlane.xlu1 %242 }
 0x34a   :  { %v244_v11 = vcvt.f32.s32 %v243_v9 }
 0x34c   :  { %v247_v22 = vadd.s32 %v246_v10, %v244_v11  ;;  %v534_v10 = vrot.slane %v533_v3, 1 }
 0x34d   :  { %v258_v28 = vpop.xlane.xlu0 %257  ;;  %v302_v60 = vpop.permute.xlu1 %301 }
 0x34e   :  { %vm263_vm9 = vcmp.eq.s32.totalorder %v247_v22, %v1366_v1  ;;  %v259_v30 = vcvt.f32.s32 %v258_v28  ;;  %v224_v22 = vsel %vm223_vm7, %v221_v49, %v222_v61 }
 0x34f   :  { %v265_v13 = vsel %vm263_vm9, %v1328_v19, 4294967295 }
 0x350   :  { %v267_v35 = vsel %vm186_vm0, %v265_v13, 2147483648  ;;  %v262_v37 = vadd.s32 %v261_v29, %v259_v30 }
 0x351   :  { %v268_v39 = vrot.slane %v267_v35, 4 }
 0x352   :  { %vm264_vm11 = vcmp.eq.s32.totalorder %v262_v37, %v1366_v1  ;;  %v535_v37 = vadd.f32 %v534_v10, %v533_v3 }
 0x353   :  { %vm269_vm12 = vcmp.gt.s32.totalorder %v267_v35, %v268_v39  ;;  %v266_v40 = vsel %vm264_vm11, %v1328_v19, 4294967295 }
 0x354   :  { %v270_v42 = vsel %vm269_vm12, %v267_v35, %v268_v39  ;;  %v277_v43 = vsel %vm186_vm0, %v266_v40, 2147483648 }
 0x355   :  { %v271_v46 = vrot.slane %v270_v42, 2  ;;  %v278_v47 = vrot.slane %v277_v43, 4 }
 0x357   :  { %vm272_vm14 = vcmp.gt.s32.totalorder %v270_v42, %v271_v46  ;;  %vm279_vm15 = vcmp.gt.s32.totalorder %v277_v43, %v278_v47 }
 0x358   :  { %v273_v50 = vsel %vm272_vm14, %v270_v42, %v271_v46  ;;  %v280_v51 = vsel %vm279_vm15, %v277_v43, %v278_v47  ;;  %v307_v46 = vpop.permute.xlu0 %306  ;;  %vm1277_vm15 = vmmov 0  }
 0x359   :  { %v274_v56 = vrot.slane %v273_v50, 1  ;;  %v281_v58 = vrot.slane %v280_v51, 2  ;;  %1100 = vmatprep.mubr.msk.bf16.mxu0 %vm1277_vm15, %v1276_v31  ;;  %1120 = vmatprep.mubr.msk.bf16.mxu1 %vm1277_vm15, %v1276_v31 }
 0x35b   :  { %vm282_vm2 = vcmp.gt.s32.totalorder %v280_v51, %v281_v58  ;;  %vm275_vm3 = vcmp.gt.s32.totalorder %v273_v50, %v274_v56 }
 0x35c   :  { %v283_v62 = vsel %vm282_vm2, %v280_v51, %v281_v58  ;;  %v276_v0 = vsel %vm275_vm3, %v273_v50, %v274_v56  ;;  %vm2362_vm2 = vcmp.lt.s32.totalorder %v1328_v19, %v1366_v1 }
 0x35d   :  { %v284_v4 = vrot.slane %v283_v62, 1  ;;  %vm287_vm4 = vcmp.ge.s32.totalorder %v276_v0, 0 }
 0x35e   :  { %v289_v6 = vsel %vm287_vm4, %v276_v0, %v214_v5  ;;  %v291_v47 = vsel %vm287_vm4, 1.0, %v1399_v55 }
 0x35f   :  { %vm293_vm5 = vcmp.eq.s32.totalorder %v289_v6, %v1328_v19  ;;  %vm285_vm6 = vcmp.gt.s32.totalorder %v283_v62, %v284_v4  ;;  %vm325_vm10 = vcmp.lt.f32.partialorder %v291_v47, 0.5  ;;  %v1464_v47 = vld [vmem:[#allocation5 + $0x8] sm:$0xff] }
 0x360   :  { %v998_v7 = vsel %vm293_vm5, 1.0, %v1276_v31  ;;  %v1428_v9 = vsel %vm285_vm6, %v283_v62, %v284_v4 }
 0x361   :  { %v309_v63 = vmul.f32 %v998_v7, %v302_v60  ;;  %v331_v11 = vmul.f32 %v998_v7, %v1322_v15  ;;  %v347_v12 = vmul.f32 %v998_v7, %v1340_v27  ;;  %v363_v17 = vmul.f32 %v998_v7, %v1324_v16 }
 0x362   :  { %v379_v21 = vmul.f32 %v998_v7, %v1326_v18  ;;  %vm288_vm8 = vcmp.ge.s32.totalorder %v1428_v9, 0  ;;  %v529_v16 = vadd.f32 %v528_v8, %v527_v2 }
 0x363   :  { %v311_v24 = vsel %vm186_vm0, %v309_v63, 0.0  ;;  %v333_v28 = vsel %vm186_vm0, %v331_v11, 0.0  ;;  %v349_v29 = vsel %vm186_vm0, %v347_v12, 0.0  ;;  %v365_v30 = vsel %vm186_vm0, %v363_v17, 0.0 }
 0x364   :  { %v312_v34 = vrot.slane %v311_v24, 4  ;;  %v334_v13 = vrot.slane %v333_v28, 4  ;;  %v350_v15 = vrot.slane %v349_v29, 4  ;;  %v366_v35 = vrot.slane %v365_v30, 4 }
 0x365   :  { %v381_v27 = vsel %vm186_vm0, %v379_v21, 0.0  ;;  %v290_v18 = vsel %vm288_vm8, %v1428_v9, %v224_v22  ;;  %1165 = vlog2.f32 %v529_v16 }
 0x366   :  { %v313_v38 = vadd.f32 %v312_v34, %v311_v24  ;;  %v335_v23 = vadd.f32 %v334_v13, %v333_v28  ;;  %v351_v39 = vadd.f32 %v350_v15, %v349_v29  ;;  %v367_v40 = vadd.f32 %v366_v35, %v365_v30 }
 0x367   :  { %v382_v41 = vrot.slane %v381_v27, 4  ;;  %vm294_vm9 = vcmp.eq.s32.totalorder %v290_v18, %v1328_v19  ;;  %1167 = vlog2.f32 %v535_v37 }
 0x368   :  { %v314_v42 = vrot.slane %v313_v38, 2  ;;  %v336_v43 = vrot.slane %v335_v23, 2  ;;  %v352_v44 = vrot.slane %v351_v39, 2  ;;  %v368_v45 = vrot.slane %v367_v40, 2 }
 0x369   :  { %v383_v48 = vadd.f32 %v382_v41, %v381_v27  ;;  %v999_v49 = vsel %vm294_vm9, 1.0, %v1276_v31 }
 0x36a   :  { %v315_v50 = vadd.f32 %v314_v42, %v313_v38  ;;  %v337_v51 = vadd.f32 %v336_v43, %v335_v23  ;;  %v353_v52 = vadd.f32 %v352_v44, %v351_v39  ;;  %v369_v53 = vadd.f32 %v368_v45, %v367_v40 }
 0x36b   :  { %v310_v56 = vmul.f32 %v999_v49, %v307_v46  ;;  %v332_v58 = vmul.f32 %v999_v49, %v1330_v20  ;;  %v348_v61 = vmul.f32 %v999_v49, %v1350_v36  ;;  %v384_v2 = vrot.slane %v383_v48, 2 }
 0x36c   :  { %v316_v62 = vrot.slane %v315_v50, 1  ;;  %v364_v0 = vmul.f32 %v999_v49, %v1320_v14  ;;  %v338_v55 = vrot.slane %v337_v51, 1  ;;  %v370_v10 = vrot.slane %v369_v53, 1 }
 0x36d   :  { %v318_v3 = vsel %vm186_vm0, %v310_v56, 0.0  ;;  %v340_v4 = vsel %vm186_vm0, %v332_v58, 0.0  ;;  %v356_v5 = vsel %vm186_vm0, %v348_v61, 0.0  ;;  %v380_v36 = vmul.f32 %v999_v49, %v1338_v26 }
 0x36e   :  { %v317_v60 = vadd.f32 %v316_v62, %v315_v50  ;;  %v319_v6 = vrot.slane %v318_v3, 4  ;;  %v341_v7 = vrot.slane %v340_v4, 4  ;;  %v357_v8 = vrot.slane %v356_v5, 4 }
 0x36f   :  { %v372_v20 = vsel %vm186_vm0, %v364_v0, 0.0  ;;  %v354_v63 = vrot.slane %v353_v52, 1  ;;  %v385_v21 = vadd.f32 %v384_v2, %v383_v48  ;;  %v388_v28 = vsel %vm186_vm0, %v380_v36, 0.0 }
 0x370   :  { %v1455_v11 = vsel %vm325_vm10, 0.0, %v317_v60  ;;  %v320_v14 = vadd.f32 %v319_v6, %v318_v3  ;;  %v342_v12 = vadd.f32 %v341_v7, %v340_v4  ;;  %v358_v17 = vadd.f32 %v357_v8, %v356_v5 }
 0x371   :  { %v1124_v22 = vtrunc.f32 %v1455_v11  ;;  %v373_v24 = vrot.slane %v372_v20, 4  ;;  %v389_v13 = vrot.slane %v388_v28, 4  ;;  %v292_v26 = vsel %vm288_vm8, 1.0, %v1407_v59 }
 0x372   :  { %v321_v29 = vrot.slane %v320_v14, 2  ;;  %v343_v30 = vrot.slane %v342_v12, 2  ;;  %v359_v34 = vrot.slane %v358_v17, 2  ;;  %v339_v27 = vadd.f32 %v338_v55, %v337_v51  ;;  %v1166_v41 = vpop.eup %1165 }
 0x373   :  { %v1125_v15 = vcvt.f32.s32 %v1124_v22  ;;  %v374_v35 = vadd.f32 %v373_v24, %v372_v20  ;;  %v390_v37 = vadd.f32 %v389_v13, %v388_v28  ;;  %v355_v38 = vadd.f32 %v354_v63, %v353_v52 }
 0x374   :  { %v322_v16 = vadd.f32 %v321_v29, %v320_v14  ;;  %v344_v18 = vadd.f32 %v343_v30, %v342_v12  ;;  %v371_v39 = vadd.f32 %v370_v10, %v369_v53  ;;  %v386_v40 = vrot.slane %v385_v21, 1  ;;  %v1168_v46 = vpop.eup %1167 }
 0x375   :  { %vm544_vm11 = vcmp.eq.s32.totalorder %v1328_v19, %v1125_v15  ;;  %v375_v23 = vrot.slane %v374_v35, 2  ;;  %v360_v44 = vadd.f32 %v359_v34, %v358_v17  ;;  %v391_v45 = vrot.slane %v390_v37, 2 }
 0x376   :  { %v546_v42 = vsel %vm544_vm11, %v1389_v32, 0.0  ;;  %v323_v43 = vrot.slane %v322_v16, 1  ;;  %v387_v48 = vadd.f32 %v386_v40, %v385_v21  ;;  %vm326_vm0 = vcmp.lt.f32.partialorder %v292_v26, 0.5 }
 0x377   :  { %v548_v9 = vrot.slane %v546_v42, 4  ;;  %v376_v59 = vadd.f32 %v375_v23, %v374_v35  ;;  %v345_v50 = vrot.slane %v344_v18, 1  ;;  %v403_v51 = vsub.f32 %v371_v39, %v339_v27 }
 0x378   :  { %v324_v49 = vadd.f32 %v323_v43, %v322_v16  ;;  %v392_v53 = vadd.f32 %v391_v45, %v390_v37  ;;  %v399_v58 = vadd.f32 %v387_v48, %v355_v38  ;;  %v405_v32 = vsub.f32 %v387_v48, %v355_v38 }
 0x379   :  { %v549_v52 = vadd.f32 %v548_v9, %v546_v42  ;;  %v377_v56 = vrot.slane %v376_v59, 1  ;;  %v421_v62 = vmul.f32 %v403_v51, %v1464_v47  ;;  %v361_v2 = vrot.slane %v360_v44, 1 }
 0x37a   :  { %v1466_v61 = vsel %vm326_vm0, 0.0, %v324_v49  ;;  %v537_v0 = vmul.f32 0.6931472, %v1166_v41  ;;  %v401_v4 = vmul.f32 0.5, %v399_v58  ;;  %v429_v5 = vmul.f32 %v405_v32, %v1464_v47  ;;  %v65_v58 = vld [vmem:[%s2355_s0 + $0x4] sm:$0xf] }
 0x37b   :  { %v550_v55 = vrot.slane %v549_v52, 2  ;;  %v1126_v3 = vtrunc.f32 %v1466_v61  ;;  %1169 = vlog2.f32 %v421_v62  ;;  %v346_v60 = vadd.f32 %v345_v50, %v344_v18 }
 0x37c   :  { %v395_v8 = vadd.f32 %v371_v39, %v339_v27  ;;  %v378_v10 = vadd.f32 %v377_v56, %v376_v59  ;;  %v417_v20 = vrot.slane %v1464_v47, 7  ;;  %1171 = vlog2.f32 %v429_v5 }
 0x37d   :  { %v551_v6 = vadd.f32 %v550_v55, %v549_v52  ;;  %v1127_v7 = vcvt.f32.s32 %v1126_v3  ;;  %v362_v36 = vadd.f32 %v361_v2, %v360_v44  ;;  %v393_v63 = vrot.slane %v392_v53, 1 }
 0x37e   :  { %v540_v14 = vadd.f32 %v537_v0, %v1397_v54  ;;  %v414_v17 = vsub.f32 %v401_v4, %v1336_v25  ;;  %v404_v24 = vsub.f32 %v378_v10, %v346_v60  ;;  %v397_v30 = vmul.f32 0.5, %v395_v8 }
 0x37f   :  { %v552_v12 = vrot.slane %v551_v6, 1  ;;  %vm545_vm12 = vcmp.eq.s32.totalorder %v1328_v19, %v1127_v7  ;;  %v394_v22 = vadd.f32 %v393_v63, %v392_v53  ;;  %v410_v34 = vrot.slane %v1336_v25, 7 }
 0x380   :  { %v547_v21 = vsel %vm545_vm12, %v1391_v33, 0.0  ;;  %v422_v26 = vmul.f32 %v404_v24, %v1464_v47  ;;  %v539_v54 = vmul.f32 0.6931472, %v1168_v46  ;;  %v419_v16 = vmul.f32 %v417_v20, %v414_v17  ;;  %v64_v33 = vld [vmem:[%s2355_s0] sm:$0xf]  ;;  %s1280_s0 = smov [#allocation8]  }
 0x381   :  { %v553_v28 = vadd.f32 %v552_v12, %v551_v6  ;;  %v554_v29 = vrot.slane %v547_v21, 4  ;;  %v400_v13 = vadd.f32 %v394_v22, %v362_v36  ;;  %v406_v15 = vsub.f32 %v394_v22, %v362_v36  ;;  %s988_s18 = sshll.u32 %s1280_s0, 4  ;;  %s989_s18 = int_to_ptr.vmem [resolvable:$true] %s988_s18 }
 0x382   :  { %vm329_vm13 = vcmp.ne.f32.partialorder %v1455_v11, 0.0  ;;  %1173 = vlog2.f32 %v422_v26  ;;  %v407_v39 = vsub.f32 %v397_v30, %v1336_v25  ;;  %v396_v40 = vadd.f32 %v378_v10, %v346_v60  ;;  %s1237_s19 = scalar_lea.vmem %s989_s18, 128  ;;  %p1242_p2 = scmp.lt.s32.totalorder %s989_s18, %s989_s18 }
 0x383   :  { %v560_v35 = vsub.f32 %v540_v14, %v553_v28  ;;  %v555_v27 = vadd.f32 %v554_v29, %v547_v21  ;;  %v402_v18 = vmul.f32 0.5, %v400_v13  ;;  %v430_v37 = vmul.f32 %v406_v15, %v1464_v47  ;;  %p1238_p1 = scmp.ne.s32.totalorder %s989_s18, %s1237_s19  ;;  %p1243_p3 = scmp.lt.s32.totalorder %s1237_s19, %s1237_s19 }
 0x384   :  { %v441_v43 = vsub.f32 %v64_v33, %v419_v16  ;;  %v541_v46 = vadd.f32 %v539_v54, %v1401_v57  ;;  %v412_v59 = vmul.f32 %v410_v34, %v407_v39  ;;  %v398_v47 = vmul.f32 0.5, %v396_v40 }
 0x385   :  { %v1485_v38 = vsel %vm329_vm13, 0.0, %v560_v35  ;;  %v556_v23 = vrot.slane %v555_v27, 2  ;;  %1175 = vlog2.f32 %v430_v37  ;;  %v1491_v41 = vsel %vm329_vm13, %v560_v35, 0.0  ;;  %p1244_p4 = por %p1243_p3, %p1242_p2 }
 0x386   :  { %601 = vxpose.xlu1.b32.start [1/16] %v1485_v38, 128  ;;  %v415_v44 = vsub.f32 %v402_v18, %v1336_v25  ;;  %v443_v51 = vand.u32 2147483647, %v441_v43  ;;  %v437_v62 = vsub.f32 %v64_v33, %v412_v59  ;;  %v408_v57 = vsub.f32 %v398_v47, %v1336_v25 }
 0x387   :  { %v557_v42 = vadd.f32 %v556_v23, %v555_v27  ;;  %vm330_vm14 = vcmp.ne.f32.partialorder %v1466_v61, 0.0  ;;  %v1558_v11 = vadd.s32 8, %v1328_v19  ;;  %p1245_p5 = pnand %p1244_p4, %p1238_p1 }
 0x388   :  { %v1170_v45 = vpop.eup %1169  ;;  %v420_v52 = vmul.f32 %v417_v20, %v415_v44  ;;  %v447_v3 = vrot.slane %v443_v51, 1  ;;  %v439_v7 = vand.u32 2147483647, %v437_v62  ;;  %v413_v8 = vmul.f32 %v410_v34, %v408_v57 }
 0x389   :  { %v558_v9 = vrot.slane %v557_v42, 1  ;;  %v424_v48 = vmul.f32 0.6931472, %v1170_v45  ;;  %v1172_v49 = vpop.eup %1171  ;;  %v1000_v45 = vsel %vm329_vm13, 1.0, %v1276_v31  ;;  %v1001_v59 = vsel %vm330_vm14, 1.0, %v1276_v31 }
 0x38a   :  { %602 = vxpose.xlu1.b32.cont [2/16] %v1485_v38, 128  ;;  %v432_v53 = vmul.f32 0.6931472, %v1172_v49  ;;  %v442_v4 = vsub.f32 %v65_v58, %v420_v52  ;;  %v451_v14 = vadd.f32 %v447_v3, %v439_v7  ;;  %v438_v28 = vsub.f32 %v65_v58, %v413_v8 }
 0x38b   :  { %v559_v50 = vadd.f32 %v558_v9, %v557_v42  ;;  %v427_v56 = vmul.f32 5.0, %v424_v48  ;;  %vm2363_vm6 = vcmp.lt.s32.totalorder %v1558_v11, %v1366_v1  ;;  %v2380_v48 = vmov 0 }
 0x38c   :  { %v435_v2 = vmul.f32 5.0, %v432_v53  ;;  %v444_v12 = vand.u32 2147483647, %v442_v4  ;;  %v440_v16 = vand.u32 2147483647, %v438_v28  ;;  %v1623_v8 = vadd.s32 16, %v1328_v19 }
 0x38d   :  { %v561_v32 = vsub.f32 %v541_v46, %v559_v50  ;;  %v455_v0 = vrot.slane %v427_v56, 7  ;;  %v1655_v28 = vadd.s32 64, %v1328_v19 }
 0x38e   :  { %603 = vxpose.xlu1.b32.cont [3/16] %v1485_v38, 128  ;;  %v473_v25 = vrot.slane %v435_v2, 7  ;;  %v448_v26 = vrot.slane %v444_v12, 1  ;;  %v1637_v12 = vadd.s32 96, %v1328_v19 }
 0x38f   :  { %v1504_v55 = vsel %vm330_vm14, 0.0, %v561_v32  ;;  %v1508_v5 = vsel %vm330_vm14, %v561_v32, 0.0  ;;  %v459_v60 = vsub.f32 %v64_v33, %v455_v0  ;;  %v1174_v6 = vpop.eup %1173  ;;  %vm2368_vm0 = vcmp.lt.s32.totalorder %v1655_v28, %v1366_v1 }
 0x390   :  { %787 = vxpose.xlu0.b32.start [1/16] %v1504_v55, 128  ;;  %v477_v20 = vsub.f32 %v64_v33, %v473_v25  ;;  %v426_v36 = vmul.f32 0.6931472, %v1174_v6  ;;  %v452_v37 = vadd.f32 %v448_v26, %v440_v16  ;;  %v2475_v16 = vmov 0 }
 0x391   :  { %v461_v10 = vand.u32 2147483647, %v459_v60 }
 0x392   :  { %604 = vxpose.xlu1.b32.cont [4/16] %v1485_v38, 128  ;;  %v1176_v63 = vpop.eup %1175  ;;  %v479_v21 = vand.u32 2147483647, %v477_v20  ;;  %v428_v22 = vmul.f32 5.0, %v426_v36  ;;  %v1628_v20 = vadd.s32 24, %v1328_v19  ;;  %v1631_v36 = vadd.s32 88, %v1328_v19 }
 0x393   :  { %v465_v17 = vrot.slane %v461_v10, 2  ;;  %v434_v24 = vmul.f32 0.6931472, %v1176_v63 }
 0x394   :  { %788 = vxpose.xlu0.b32.cont [2/16] %v1504_v55, 128  ;;  %v483_v30 = vrot.slane %v479_v21, 3  ;;  %v456_v13 = vrot.slane %v428_v22, 7  ;;  %v1647_v22 = vadd.s32 104, %v1328_v19 }
 0x395   :  { %v469_v29 = vadd.f32 %v465_v17, %v451_v14  ;;  %v436_v34 = vmul.f32 5.0, %v434_v24  ;;  %v1634_v14 = vadd.s32 72, %v1328_v19  ;;  %v1642_v17 = vadd.s32 56, %v1328_v19 }
 0x396   :  { %605 = vxpose.xlu1.b32.cont [5/16] %v1485_v38, 128  ;;  %v460_v35 = vsub.f32 %v65_v58, %v456_v13  ;;  %v1652_v24 = vadd.s32 32, %v1328_v19 }
 0x397   :  { %v487_v15 = vadd.f32 %v483_v30, %v469_v29  ;;  %v474_v54 = vrot.slane %v436_v34, 7  ;;  %v1658_v29 = vadd.s32 112, %v1328_v19  ;;  %v1661_v30 = vadd.s32 40, %v1328_v19 }
 0x398   :  { %789 = vxpose.xlu0.b32.cont [3/16] %v1504_v55, 128  ;;  %v462_v33 = vand.u32 2147483647, %v460_v35  ;;  %v1664_v34 = vadd.s32 80, %v1328_v19  ;;  %v2455_v35 = vmov 0 }
 0x399   :  { %v489_v27 = vsel %vm329_vm13, %v487_v15, 0.0  ;;  %v478_v18 = vsub.f32 %v65_v58, %v474_v54  ;;  %v1678_v15 = vadd.s32 48, %v1328_v19  ;;  %v1701_v54 = vadd.s32 120, %v1328_v19 }
 0x39a   :  { %606 = vxpose.xlu1.b32.cont [6/16] %v1485_v38, 128  ;;  %v466_v23 = vrot.slane %v462_v33, 2  ;;  %v492_v46 = vsel %vm2361_vm1, %v489_v27, 0.0  ;;  %v2478_v27 = vmov 0 }
 0x39b   :  { %v480_v39 = vand.u32 2147483647, %v478_v18  ;;  %v2500_v18 = vmov 0 }
 0x39c   :  { %790 = vxpose.xlu0.b32.cont [4/16] %v1504_v55, 128  ;;  %v470_v40 = vadd.f32 %v466_v23, %v452_v37  ;;  %v2504_v37 = vmov 0 }
 0x39d   :  { %v484_v42 = vrot.slane %v480_v39, 3 }
 0x39e   :  { %607 = vxpose.xlu1.b32.cont [7/16] %v1485_v38, 128 }
 0x39f   :  { %v488_v43 = vadd.f32 %v484_v42, %v470_v40  ;;  %v2396_v40 = vmov 0 }
 0x3a0   :  { %791 = vxpose.xlu0.b32.cont [5/16] %v1504_v55, 128 }
 0x3a1   :  { %v490_v44 = vsel %vm330_vm14, %v488_v43, 0.0  ;;  %vm2364_vm14 = vcmp.lt.s32.totalorder %v1631_v36, %v1366_v1  ;;  %v2404_v43 = vmov 0 }
 0x3a2   :  { %608 = vxpose.xlu1.b32.cont [8/16] %v1485_v38, 128  ;;  %v495_v9 = vsel %vm2361_vm1, %v490_v44, 0.0  ;;  %v2407_v44 = vmov 0 }
 0x3a4   :  { %792 = vxpose.xlu0.b32.cont [6/16] %v1504_v55, 128 }
 0x3a6   :  { %609 = vxpose.xlu1.b32.cont [9/16] %v1485_v38, 128 }
 0x3a8   :  { %793 = vxpose.xlu0.b32.cont [7/16] %v1504_v55, 128 }
 0x3aa   :  { %610 = vxpose.xlu1.b32.cont [10/16] %v1485_v38, 128 }
 0x3ac   :  { %794 = vxpose.xlu0.b32.cont [8/16] %v1504_v55, 128 }
 0x3ae   :  { %611 = vxpose.xlu1.b32.cont [11/16] %v1485_v38, 128 }
 0x3b0   :  { %795 = vxpose.xlu0.b32.cont [9/16] %v1504_v55, 128 }
 0x3b2   :  { %612 = vxpose.xlu1.b32.cont [12/16] %v1485_v38, 128 }
 0x3b4   :  { %796 = vxpose.xlu0.b32.cont [10/16] %v1504_v55, 128 }
 0x3b6   :  { %613 = vxpose.xlu1.b32.cont [13/16] %v1485_v38, 128 }
 0x3b8   :  { %797 = vxpose.xlu0.b32.cont [11/16] %v1504_v55, 128 }
 0x3ba   :  { %614 = vxpose.xlu1.b32.cont [14/16] %v1485_v38, 128 }
 0x3bc   :  { %798 = vxpose.xlu0.b32.cont [12/16] %v1504_v55, 128 }
 0x3be   :  { %615 = vxpose.xlu1.b32.cont [15/16] %v1485_v38, 128 }
 0x3c0   :  { %799 = vxpose.xlu0.b32.cont [13/16] %v1504_v55, 128 }
 0x3c2   :  { %616 = vxpose.xlu1.b32.end [16/16] %v1485_v38, 128 }
 0x3c4   :  { %800 = vxpose.xlu0.b32.cont [14/16] %v1504_v55, 128 }
 0x3c8   :  { %801 = vxpose.xlu0.b32.cont [15/16] %v1504_v55, 128 }
 0x3cc   :  { %802 = vxpose.xlu0.b32.end [16/16] %v1504_v55, 128 }
 0x3e9   :  { %502 = vadd.xlane.f32.xlu1 %v1000_v45  ;;  %v2410_v45 = vmov 0 }
 0x3ed   :  { %493 = vadd.xlane.f32.xlu1 %v492_v46  ;;  %v2413_v46 = vmov 0 }
 0x3f1   :  { %496 = vadd.xlane.f32.xlu1 %v495_v9 }
 0x3f5   :  { %564 = vadd.xlane.f32.xlu1 %v1491_v41  ;;  %v2378_v41 = vmov 0 }
 0x3f9   :  { %504 = vadd.xlane.f32.xlu0 %v1001_v59  ;;  %566 = vadd.xlane.f32.xlu1 %v1508_v5  ;;  %v2417_v59 = vmov 0 }
 0x402   :  { %v617_v47 = vpop.trf.xlu1 }
 0x403   :  { %vm649_vm3 = vcmp.eq.f32.partialorder %v617_v47, %v1485_v38  ;;  %vm633_vm4 = vcmp.gt.f32.partialorder %v617_v47, %v1485_v38  ;;  %v2421_v47 = vmov 0 }
 0x404   :  { %vm665_vm5 = vmand %vm649_vm3, %vm2362_vm2  ;;  %vm2365_vm3 = vcmp.lt.s32.totalorder %v1634_v14, %v1366_v1 }
 0x405   :  { %vm1567_vm7 = vmor %vm633_vm4, %vm665_vm5  ;;  %vm2366_vm5 = vcmp.lt.s32.totalorder %v1637_v12, %v1366_v1 }
 0x406   :  { %v618_v61 = vpop.trf.xlu1  ;;  %v2379_v41 = vsel %vm1567_vm7, 4294967295, %v2378_v41  ;;  %vm2402_vm7 = vcmp.lt.s32.totalorder %v1642_v17, %v1366_v1 }
 0x407   :  { %vm634_vm8 = vcmp.gt.f32.partialorder %v618_v61, %v1485_v38  ;;  %vm650_vm9 = vcmp.eq.f32.partialorder %v618_v61, %v1485_v38 }
 0x408   :  { %vm666_vm10 = vmand %vm650_vm9, %vm2363_vm6 }
 0x409   :  { %vm1576_vm11 = vmor %vm634_vm8, %vm666_vm10  ;;  %vm2367_vm10 = vcmp.lt.s32.totalorder %v1647_v22, %v1366_v1 }
 0x40a   :  { %v2381_v48 = vsel %vm1576_vm11, 4294967295, %v2380_v48  ;;  %v1580_v49 = vpop.trf.xlu1 }
 0x40c   :  { %v1586_v50 = vpop.trf.xlu0 }
 0x40e   :  { %v1588_v51 = vpop.trf.xlu1 }
 0x40f   :  { %vm652_vm9 = vcmp.eq.f32.partialorder %v1588_v51, %v1485_v38 }
 0x410   :  { %v1590_v52 = vpop.trf.xlu0 }
 0x412   :  { %v1592_v56 = vpop.trf.xlu1 }
 0x414   :  { %v1594_v53 = vpop.trf.xlu0 }
 0x416   :  { %v1596_v58 = vpop.trf.xlu1 }
 0x418   :  { %v1598_v32 = vpop.trf.xlu0 }
 0x41a   :  { %v1600_v62 = vpop.trf.xlu1 }
 0x41c   :  { %v1602_v57 = vpop.trf.xlu0 }
 0x41e   :  { %v1604_v2 = vpop.trf.xlu1 }
 0x420   :  { %v1606_v0 = vpop.trf.xlu0 }
 0x422   :  { %v1608_v3 = vpop.trf.xlu1 }
 0x423   :  { %vm657_vm2 = vcmp.eq.f32.partialorder %v1608_v3, %v1485_v38 }
 0x424   :  { %v1610_v4 = vpop.trf.xlu0 }
 0x426   :  { %v1612_v5 = vpop.trf.xlu1 }
 0x427   :  { %vm658_vm4 = vcmp.eq.f32.partialorder %v1612_v5, %v1485_v38 }
 0x428   :  { %v1614_v60 = vpop.trf.xlu0 }
 0x42a   :  { %v1616_v25 = vpop.trf.xlu1 }
 0x42c   :  { %v1618_v6 = vpop.trf.xlu0 }
 0x42e   :  { %v1620_v7 = vpop.trf.xlu1 }
 0x42f   :  { %vm660_vm15 = vcmp.eq.f32.partialorder %v1620_v7, %v1485_v38 }
 0x430   :  { %v1625_v10 = vpop.trf.xlu0  ;;  %vm1694_vm6 = vmand %vm660_vm15, %vm2364_vm14  ;;  %vm2399_vm14 = vcmp.eq.f32.partialorder %v1616_v25, %v1485_v38 }
 0x431   :  { %vm1713_vm15 = vmand %vm658_vm4, %vm2365_vm3  ;;  %vm2392_vm4 = vcmp.lt.s32.totalorder %v1658_v29, %v1366_v1 }
 0x432   :  { %v629_v63 = vpop.trf.xlu1 }
 0x433   :  { %vm661_vm8 = vcmp.eq.f32.partialorder %v629_v63, %v1485_v38 }
 0x434   :  { %v1644_v21 = vpop.trf.xlu0  ;;  %vm1726_vm13 = vmand %vm661_vm8, %vm2366_vm5 }
 0x436   :  { %v630_v13 = vpop.trf.xlu1 }
 0x437   :  { %vm662_vm1 = vcmp.eq.f32.partialorder %v630_v13, %v1485_v38 }
 0x438   :  { %v1682_v26 = vpop.trf.xlu0  ;;  %vm1739_vm12 = vmand %vm662_vm1, %vm2367_vm10 }
 0x439   :  { %vm1756_vm1 = vmand %vm657_vm2, %vm2368_vm0  ;;  %vm2395_vm2 = vcmp.lt.s32.totalorder %v1628_v20, %v1366_v1 }
 0x43a   :  { %v631_v33 = vpop.trf.xlu1  ;;  %vm1778_vm0 = vmand %vm652_vm9, %vm2395_vm2  ;;  %vm2406_vm2 = vcmp.gt.f32.partialorder %v1620_v7, %v1485_v38  ;;  %v2428_v7 = vmov 0 }
 0x43b   :  { %vm663_vm8 = vcmp.eq.f32.partialorder %v631_v33, %v1485_v38  ;;  %v2397_v40 = vsel %vm1778_vm0, 4294967295, %v2396_v40  ;;  %vm1821_vm10 = vmor %vm2406_vm2, %vm1694_vm6  ;;  %vm2415_vm6 = vcmp.lt.s32.totalorder %v1623_v8, %v1366_v1  ;;  %vm2416_vm2 = vcmp.eq.f32.partialorder %v1580_v49, %v1485_v38 }
 0x43c   :  { %v1760_v23 = vpop.trf.xlu0  ;;  %vm1766_vm5 = vmand %vm663_vm8, %vm2392_vm4  ;;  %vm2398_vm8 = vcmp.lt.s32.totalorder %v1664_v34, %v1366_v1  ;;  %v2408_v44 = vsel %vm1821_vm10, 4294967295, %v2407_v44  ;;  %vm2409_vm4 = vcmp.gt.f32.partialorder %v629_v63, %v1485_v38  ;;  %vm2430_vm10 = vcmp.lt.s32.totalorder %v1678_v15, %v1366_v1 }
 0x43d   :  { %vm1792_vm3 = vmand %vm2399_vm14, %vm2398_vm8  ;;  %vm2403_vm14 = vcmp.eq.f32.partialorder %v1604_v2, %v1485_v38 }
 0x43e   :  { %vm1810_vm8 = vmand %vm2403_vm14, %vm2402_vm7  ;;  %vm2412_vm14 = vcmp.gt.f32.partialorder %v630_v13, %v1485_v38  ;;  %v632_v9 = vpop.trf.xlu1 }
 0x43f   :  { %v2405_v43 = vsel %vm1810_vm8, 4294967295, %v2404_v43  ;;  %vm1829_vm7 = vmor %vm2409_vm4, %vm1726_vm13  ;;  %vm2419_vm13 = vcmp.lt.s32.totalorder %v1628_v20, %v1366_v1  ;;  %v2432_v20 = vmov 0 }
 0x440   :  { %v2411_v45 = vsel %vm1829_vm7, 4294967295, %v2410_v45  ;;  %vm1837_vm9 = vmor %vm2412_vm14, %vm1739_vm12  ;;  %vm2420_vm12 = vcmp.eq.f32.partialorder %v1598_v32, %v1504_v55  ;;  %v816_v63 = vpop.trf.xlu0 }
 0x441   :  { %v2414_v46 = vsel %vm1837_vm9, 4294967295, %v2413_v46  ;;  %vm1847_vm11 = vmand %vm2416_vm2, %vm2415_vm6  ;;  %vm664_vm2 = vcmp.eq.f32.partialorder %v632_v9, %v1485_v38  ;;  %vm2431_vm6 = vcmp.eq.f32.partialorder %v1600_v62, %v1485_v38  ;;  %vm2463_vm9 = vcmp.eq.f32.partialorder %v1618_v6, %v1504_v55 }
 0x442   :  { %v2418_v59 = vsel %vm1847_vm11, 4294967295, %v2417_v59  ;;  %vm1857_vm4 = vmand %vm2420_vm12, %vm2419_vm13  ;;  %vm2423_vm11 = vcmp.gt.f32.partialorder %v631_v33, %v1485_v38  ;;  %vm2426_vm13 = vcmp.lt.s32.totalorder %v1558_v11, %v1366_v1  ;;  %vm2427_vm12 = vcmp.eq.f32.partialorder %v1590_v52, %v1504_v55 }
 0x443   :  { %v2422_v47 = vsel %vm1857_vm4, 4294967295, %v2421_v47  ;;  %vm1871_vm8 = vmor %vm2423_vm11, %vm1766_vm5  ;;  %v2435_v11 = vmov 0  ;;  %vm2438_vm5 = vcmp.lt.s32.totalorder %v1623_v8, %v1366_v1  ;;  %v2444_v8 = vmov 0 }
 0x444   :  { %vm1881_vm14 = vmand %vm2427_vm12, %vm2426_vm13  ;;  %vm2434_vm13 = vcmp.gt.f32.partialorder %v1616_v25, %v1485_v38  ;;  %v2440_v25 = vmov 0  ;;  %v1278_v33 = vmov 1.0|1.0  }
 0x445   :  { %v2429_v7 = vsel %vm1881_vm14, 4294967295, %v2428_v7  ;;  %vm1891_vm11 = vmand %vm2431_vm6, %vm2430_vm10  ;;  %vm2437_vm10 = vcmp.lt.s32.totalorder %v1701_v54, %v1366_v1  ;;  %vm2442_vm14 = vcmp.lt.s32.totalorder %v1634_v14, %v1366_v1  ;;  %v2451_v14 = vmov 0 }
 0x446   :  { %v2433_v20 = vsel %vm1891_vm11, 4294967295, %v2432_v20  ;;  %vm1902_vm12 = vmor %vm2434_vm13, %vm1792_vm3  ;;  %vm2439_vm11 = vcmp.eq.f32.partialorder %v1594_v53, %v1504_v55  ;;  %vm653_vm13 = vcmp.eq.f32.partialorder %v1592_v56, %v1485_v38  ;;  %vm2449_vm3 = vcmp.lt.s32.totalorder %v1328_v19, %v1366_v1 }
 0x447   :  { %v2436_v11 = vsel %vm1902_vm12, 4294967295, %v2435_v11  ;;  %vm680_vm6 = vmand %vm664_vm2, %vm2437_vm10  ;;  %vm2443_vm2 = vcmp.eq.f32.partialorder %v1625_v10, %v1504_v55  ;;  %vm2450_vm12 = vcmp.eq.f32.partialorder %v1586_v50, %v1504_v55  ;;  %v2459_v19 = vmov 0 }
 0x448   :  { %vm1917_vm4 = vmand %vm2439_vm11, %vm2438_vm5  ;;  %vm848_vm11 = vcmp.eq.f32.partialorder %v816_v63, %v1504_v55  ;;  %vm2446_vm5 = vcmp.gt.f32.partialorder %v632_v9, %v1485_v38 }
 0x449   :  { %v2441_v25 = vsel %vm1917_vm4, 4294967295, %v2440_v25  ;;  %vm1931_vm10 = vmand %vm2443_vm2, %vm2442_vm14  ;;  %vm2453_vm14 = vcmp.lt.s32.totalorder %v1661_v30, %v1366_v1  ;;  %vm2454_vm2 = vcmp.eq.f32.partialorder %v1596_v58, %v1485_v38 }
 0x44a   :  { %v2445_v8 = vsel %vm1931_vm10, 4294967295, %v2444_v8  ;;  %vm1938_vm4 = vmor %vm2446_vm5, %vm680_vm6  ;;  %vm642_vm5 = vcmp.gt.f32.partialorder %v1612_v5, %v1485_v38  ;;  %vm2457_vm10 = vcmp.lt.s32.totalorder %v1631_v36, %v1366_v1  ;;  %v2464_v5 = vmov 0 }
 0x44b   :  { %vm1948_vm0 = vmand %vm2450_vm12, %vm2449_vm3  ;;  %vm2458_vm12 = vcmp.eq.f32.partialorder %v1682_v26, %v1504_v55 }
 0x44c   :  { %v2452_v14 = vsel %vm1948_vm0, 4294967295, %v2451_v14  ;;  %vm1958_vm6 = vmand %vm2454_vm2, %vm2453_vm14  ;;  %vm832_vm0 = vcmp.gt.f32.partialorder %v816_v63, %v1504_v55  ;;  %vm2461_vm14 = vcmp.lt.s32.totalorder %v1647_v22, %v1366_v1  ;;  %v2471_v22 = vmov 0 }
 0x44d   :  { %v2456_v35 = vsel %vm1958_vm6, 4294967295, %v2455_v35  ;;  %vm1970_vm3 = vmand %vm2458_vm12, %vm2457_vm10  ;;  %vm2462_vm6 = vcmp.lt.s32.totalorder %v1655_v28, %v1366_v1  ;;  %vm845_vm10 = vcmp.eq.f32.partialorder %v1644_v21, %v1504_v55  ;;  %vm2466_vm12 = vcmp.lt.s32.totalorder %v1637_v12, %v1366_v1  ;;  %v817_v28 = vpop.trf.xlu0 }
 0x44e   :  { %v2460_v19 = vsel %vm1970_vm3, 4294967295, %v2459_v19  ;;  %vm864_vm2 = vmand %vm848_vm11, %vm2461_vm14  ;;  %vm2467_vm3 = vcmp.eq.f32.partialorder %v1760_v23, %v1504_v55  ;;  %vm2470_vm14 = vcmp.lt.s32.totalorder %v1652_v24, %v1366_v1  ;;  %v2473_v12 = vmov 0 }
 0x44f   :  { %vm1984_vm7 = vmand %vm2463_vm9, %vm2462_vm6  ;;  %vm849_vm6 = vcmp.eq.f32.partialorder %v817_v28, %v1504_v55 }
 0x450   :  { %v2465_v5 = vsel %vm1984_vm7, 4294967295, %v2464_v5  ;;  %vm1996_vm11 = vmand %vm2467_vm3, %vm2466_vm12  ;;  %vm2486_vm3 = vnez %v2397_v40 }
 0x451   :  { %vm2003_vm9 = vmand %vm653_vm13, %vm2470_vm14  ;;  %vm2484_vm14 = vnez %v2411_v45 }
 0x452   :  { %v2472_v22 = vsel %vm2003_vm9, 4294967295, %v2471_v22  ;;  %vm1018_vm7 = vmpackc.low %vm1938_vm4, %vm1871_vm8  ;;  %vm640_vm8 = vcmp.gt.f32.partialorder %v1604_v2, %v1485_v38  ;;  %v2482_v2 = vmov 0 }
 0x453   :  { %vm2017_vm12 = vmor %vm642_vm5, %vm1713_vm15  ;;  %1085 = vmatpush3.bf16.msk.msra.mxu0 %vm1018_vm7, %v1278_v33  ;;  %vm2477_vm15 = vcmp.lt.s32.totalorder %v1664_v34, %v1366_v1  ;;  %vm2487_vm7 = vcmp.gt.f32.partialorder %v1588_v51, %v1485_v38  ;;  %v2494_v51 = vmov 0 }
 0x454   :  { %v2474_v12 = vsel %vm2017_vm12, 4294967295, %v2473_v12  ;;  %vm2021_vm13 = vmor %vm832_vm0, %vm864_vm2  ;;  %vm2480_vm0 = vcmp.lt.s32.totalorder %v1658_v29, %v1366_v1  ;;  %1086 = vmatprep.subr.bf16.mxu0 %v1276_v31  ;;  %v2488_v29 = vmov 0 }
 0x455   :  { %v2476_v16 = vsel %vm2021_vm13, 4294967295, %v2475_v16  ;;  %vm2033_vm4 = vmand %vm845_vm10, %vm2477_vm15  ;;  %vm2481_vm10 = vcmp.gt.f32.partialorder %v1608_v3, %v1485_v38  ;;  %v818_v3 = vpop.trf.xlu0  ;;  %vm2520_vm13 = vnez %v2445_v8 }
 0x456   :  { %v2479_v27 = vsel %vm2033_vm4, 4294967295, %v2478_v27  ;;  %vm865_vm5 = vmand %vm849_vm6, %vm2480_vm0  ;;  %vm2485_vm6 = vnez %v2414_v46 }
 0x457   :  { %vm2050_vm15 = vmor %vm2481_vm10, %vm1756_vm1  ;;  %vm2490_vm10 = vcmp.gt.f32.partialorder %v817_v28, %v1504_v55  ;;  %vm850_vm1 = vcmp.eq.f32.partialorder %v818_v3, %v1504_v55 }
 0x458   :  { %v2483_v2 = vsel %vm2050_vm15, 4294967295, %v2482_v2  ;;  %vm1020_vm0 = vmpackc.low %vm2485_vm6, %vm2484_vm14  ;;  %vm2493_vm6 = vnez %v2405_v43  ;;  %vm2511_vm14 = vnez %v2433_v20  ;;  %vm2516_vm15 = vnez %v2441_v25 }
 0x459   :  { %vm2065_vm4 = vmor %vm2487_vm7, %vm2486_vm3  ;;  %1087 = vmatpush3.bf16.msk.msra.mxu0 %vm1020_vm0, %v1278_v33  ;;  %vm2502_vm7 = vnez %v2422_v47  ;;  %vm2503_vm0 = vcmp.gt.f32.partialorder %v1598_v32, %v1504_v55  ;;  %v2513_v32 = vmov 0 }
 0x45a   :  { %v2489_v29 = vsel %vm2065_vm4, 4294967295, %v2488_v29  ;;  %vm2073_vm12 = vmor %vm2490_vm10, %vm865_vm5  ;;  %vm2496_vm5 = vnez %v2436_v11  ;;  %vm2497_vm10 = vnez %v2408_v44  ;;  %1088 = vmatprep.subr.bf16.mxu0 %v1276_v31 }
 0x45b   :  { %vm2081_vm2 = vmor %vm640_vm8, %vm2493_vm6  ;;  %vm2498_vm6 = vnez %v2418_v59  ;;  %vm2512_vm8 = vcmp.gt.f32.partialorder %v1600_v62, %v1485_v38  ;;  %v2522_v62 = vmov 0 }
 0x45c   :  { %v2495_v51 = vsel %vm2081_vm2, 4294967295, %v2494_v51  ;;  %vm2499_vm2 = vcmp.gt.f32.partialorder %v1580_v49, %v1485_v38  ;;  %vm2110_vm4 = vmor %vm2503_vm0, %vm2502_vm7  ;;  %vm2508_vm7 = vcmp.gt.f32.partialorder %v1590_v52, %v1504_v55  ;;  %v2509_v49 = vmov 0 }
 0x45d   :  { %vm2101_vm3 = vmor %vm2499_vm2, %vm2498_vm6  ;;  %v2505_v37 = vsel %vm2110_vm4, 4294967295, %v2504_v37  ;;  %vm2506_vm2 = vcmp.lt.s32.totalorder %v1701_v54, %v1366_v1  ;;  %v2518_v52 = vmov 0 }
 0x45e   :  { %v2501_v18 = vsel %vm2101_vm3, 4294967295, %v2500_v18  ;;  %vm866_vm6 = vmand %vm850_vm1, %vm2506_vm2  ;;  %vm2507_vm3 = vnez %v2429_v7  ;;  %vm842_vm1 = vcmp.eq.f32.partialorder %v1614_v60, %v1504_v55  ;;  %vm827_vm2 = vcmp.gt.f32.partialorder %v1618_v6, %v1504_v55 }
 0x45f   :  { %vm2127_vm0 = vmor %vm2508_vm7, %vm2507_vm3  ;;  %vm2515_vm7 = vcmp.gt.f32.partialorder %v818_v3, %v1504_v55  ;;  %vm2521_vm3 = vcmp.gt.f32.partialorder %v1625_v10, %v1504_v55  ;;  %v2530_v6 = vmov 0  ;;  %v2541_v10 = vmov 0 }
 0x460   :  { %v2510_v49 = vsel %vm2127_vm0, 4294967295, %v2509_v49  ;;  %vm2136_vm4 = vmor %vm2512_vm8, %vm2511_vm14  ;;  %vm2517_vm14 = vcmp.gt.f32.partialorder %v1594_v53, %v1504_v55 }
 0x461   :  { %v2514_v32 = vsel %vm2136_vm4, 4294967295, %v2513_v32  ;;  %vm882_vm0 = vmor %vm2515_vm7, %vm866_vm6  ;;  %vm2525_vm7 = vcmp.gt.f32.partialorder %v1586_v50, %v1504_v55  ;;  %vm2528_vm4 = vnez %v2456_v35 }
 0x462   :  { %vm2153_vm8 = vmor %vm2517_vm14, %vm2516_vm15  ;;  %vm2524_vm15 = vnez %v2452_v14 }
 0x463   :  { %v2519_v52 = vsel %vm2153_vm8, 4294967295, %v2518_v52  ;;  %vm2164_vm9 = vmor %vm2521_vm3, %vm2520_vm13  ;;  %vm2529_vm13 = vcmp.gt.f32.partialorder %v1596_v58, %v1485_v38  ;;  %v2538_v58 = vmov 0 }
 0x464   :  { %v2523_v62 = vsel %vm2164_vm9, 4294967295, %v2522_v62  ;;  %vm1050_vm6 = vmpackc.low %vm882_vm0, %vm2073_vm12  ;;  %vm841_vm12 = vcmp.eq.f32.partialorder %v1610_v4, %v1504_v55  ;;  %vm2532_vm0 = vnez %v2460_v19  ;;  %vm2553_vm9 = vnez %v2474_v12 }
 0x465   :  { %vm2175_vm14 = vmor %vm2525_vm7, %vm2524_vm15  ;;  %vm2533_vm15 = vcmp.gt.f32.partialorder %v1682_v26, %v1504_v55  ;;  %1105 = vmatpush3.bf16.msk.msra.mxu1 %vm1050_vm6, %v1278_v33  ;;  %vm829_vm6 = vcmp.gt.f32.partialorder %v1644_v21, %v1504_v55 }
 0x466   :  { %vm2184_vm3 = vmor %vm2529_vm13, %vm2528_vm4  ;;  %vm2537_vm13 = vcmp.lt.s32.totalorder %v1642_v17, %v1366_v1  ;;  %1106 = vmatprep.subr.bf16.mxu1 %v1276_v31  ;;  %v2546_v17 = vmov 0 }
 0x467   :  { %v2531_v6 = vsel %vm2184_vm3, 4294967295, %v2530_v6  ;;  %vm2195_vm7 = vmor %vm2533_vm15, %vm2532_vm0  ;;  %vm2540_vm0 = vnez %v2465_v5 }
 0x468   :  { %vm2536_vm4 = vmpackc.low %vm2497_vm10, %vm2496_vm5  ;;  %vm2543_vm5 = vcmp.gt.f32.partialorder %v1760_v23, %v1504_v55  ;;  %vm2567_vm8 = vnez %v2531_v6 }
 0x469   :  { %1089 = vmatpush3.bf16.msk.msra.mxu0 %vm2536_vm4, %v1278_v33  ;;  %vm2209_vm3 = vmand %vm842_vm1, %vm2537_vm13  ;;  %vm2544_vm1 = vnez %v2472_v22  ;;  %vm2548_vm13 = vnez %v2476_v16 }
 0x46a   :  { %v2539_v58 = vsel %vm2209_vm3, 4294967295, %v2538_v58  ;;  %vm2215_vm15 = vmor %vm827_vm2, %vm2540_vm0  ;;  %1090 = vmatprep.subr.bf16.mxu0 %v1276_v31  ;;  %vm2545_vm2 = vcmp.gt.f32.partialorder %v1592_v56, %v1485_v38  ;;  %vm2549_vm3 = vcmp.lt.s32.totalorder %v1678_v15, %v1366_v1  ;;  %v2558_v56 = vmov 0 }
 0x46b   :  { %v2542_v10 = vsel %vm2215_vm15, 4294967295, %v2541_v10  ;;  %vm879_vm10 = vmor %vm2543_vm5, %vm1996_vm11  ;;  %vm2552_vm5 = vnez %v2483_v2 }
 0x46c   :  { %vm2233_vm4 = vmor %vm2545_vm2, %vm2544_vm1  ;;  %vm839_vm1 = vcmp.eq.f32.partialorder %v1602_v57, %v1504_v55  ;;  %vm2554_vm2 = vnez %v2479_v27 }
 0x46d   :  { %v2547_v17 = vsel %vm2233_vm4, 4294967295, %v2546_v17  ;;  %vm1052_vm0 = vmpackc.low %vm2548_vm13, %vm879_vm10  ;;  %vm2557_vm13 = vcmp.lt.s32.totalorder %v1652_v24, %v1366_v1 }
 0x46e   :  { %vm2242_vm11 = vmand %vm841_vm12, %vm2549_vm3  ;;  %1107 = vmatpush3.bf16.msk.msra.mxu1 %vm1052_vm0, %v1278_v33  ;;  %vm2561_vm0 = vnez %v2495_v51  ;;  %vm2566_vm10 = vnez %v2547_v17 }
 0x46f   :  { %vm1024_vm15 = vmpackc.low %vm2553_vm9, %vm2552_vm5  ;;  %1108 = vmatprep.subr.bf16.mxu1 %v1276_v31  ;;  %vm2556_vm9 = vnez %v2489_v29 }
 0x470   :  { %vm877_vm4 = vmor %vm829_vm6, %vm2554_vm2  ;;  %1091 = vmatpush3.bf16.msk.msra.mxu0 %vm1024_vm15, %v1278_v33  ;;  %vm2560_vm15 = vnez %v2514_v32  ;;  %vm2563_vm2 = vnez %v2510_v49 }
 0x471   :  { %vm1054_vm3 = vmpackc.low %vm2195_vm7, %vm877_vm4  ;;  %1092 = vmatprep.subr.bf16.mxu0 %v1276_v31  ;;  %vm825_vm4 = vcmp.gt.f32.partialorder %v1610_v4, %v1504_v55 }
 0x472   :  { %vm2267_vm6 = vmand %vm839_vm1, %vm2557_vm13  ;;  %1109 = vmatpush3.bf16.msk.msra.mxu1 %vm1054_vm3, %v1278_v33  ;;  %vm826_vm1 = vcmp.gt.f32.partialorder %v1614_v60, %v1504_v55  ;;  %vm840_vm3 = vcmp.eq.f32.partialorder %v1606_v0, %v1504_v55  ;;  %vm824_vm13 = vcmp.gt.f32.partialorder %v1606_v0, %v1504_v55 }
 0x473   :  { %v2559_v56 = vsel %vm2267_vm6, 4294967295, %v2558_v56  ;;  %vm1026_vm5 = vmpackc.low %vm2561_vm0, %vm2560_vm15  ;;  %1110 = vmatprep.subr.bf16.mxu1 %v1276_v31  ;;  %vm2564_vm15 = vnez %v2542_v10  ;;  %vm2565_vm0 = vnez %v2523_v62  ;;  %vm2568_vm6 = vnez %v2539_v58 }
 0x474   :  { %1093 = vmatpush3.bf16.msk.msra.mxu0 %vm1026_vm5, %v1278_v33  ;;  %vm1056_vm5 = vmpackc.low %vm2565_vm0, %vm2564_vm15  ;;  %vm2569_vm15 = vcmp.lt.s32.totalorder %v1661_v30, %v1366_v1  ;;  %v1279_v1 = vmov 1065369472  }
 0x475   :  { %1094 = vmatprep.subr.bf16.mxu0 %v1276_v31  ;;  %vm1028_vm7 = vmpackc.low %vm2567_vm8, %vm2566_vm10  ;;  %vm823_vm10 = vcmp.gt.f32.partialorder %v1602_v57, %v1504_v55 }
 0x476   :  { %vm874_vm12 = vmor %vm826_vm1, %vm2568_vm6  ;;  %1111 = vmatpush3.bf16.msk.msra.mxu1 %vm1056_vm5, %v1278_v33 }
 0x477   :  { %vm856_vm0 = vmand %vm840_vm3, %vm2569_vm15  ;;  %1112 = vmatprep.subr.bf16.mxu1 %v1276_v31 }
 0x478   :  { %1095 = vmatpush3.bf16.msk.msra.mxu0 %vm1028_vm7, %v1278_v33  ;;  %vm873_vm8 = vmor %vm825_vm4, %vm2242_vm11  ;;  %vm2570_vm7 = vnez %v2501_v18  ;;  %vm2572_vm11 = vnez %v2559_v56 }
 0x479   :  { %1096 = vmatprep.subr.bf16.mxu0 %v1276_v31  ;;  %vm1058_vm6 = vmpackc.low %vm874_vm12, %vm873_vm8  ;;  %vm2573_vm12 = vnez %v2381_v48 }
 0x47a   :  { %vm872_vm1 = vmor %vm824_vm13, %vm856_vm0  ;;  %1113 = vmatpush3.bf16.msk.msra.mxu1 %vm1058_vm6, %v1278_v33  ;;  %vm2574_vm13 = vnez %v2379_v41  ;;  %vm2577_vm0 = vnez %v2519_v52  ;;  %v503_v41 = vpop.xlane.xlu1 %502 }
 0x47b   :  { %vm2571_vm3 = vmpackc.low %vm2556_vm9, %vm2570_vm7  ;;  %1114 = vmatprep.subr.bf16.mxu1 %v1276_v31  ;;  %vm2576_vm9 = vnez %v2505_v37 }
 0x47c   :  { %1097 = vmatpush3.bf16.msk.msra.mxu0 %vm2571_vm3, %v1278_v33  ;;  %vm871_vm4 = vmor %vm823_vm10, %vm2572_vm11 }
 0x47d   :  { %1098 = vmatprep.subr.bf16.mxu0 %v1276_v31  ;;  %vm1060_vm5 = vmpackc.low %vm872_vm1, %vm871_vm4 }
 0x47e   :  { %1115 = vmatpush3.bf16.msk.msra.mxu1 %vm1060_vm5, %v1278_v33  ;;  %vm2575_vm15 = vmpackc.low %vm2573_vm12, %vm2574_vm13  ;;  %v494_v48 = vpop.xlane.xlu1 %493 }
 0x47f   :  { %1116 = vmatprep.subr.bf16.mxu1 %v1276_v31  ;;  %vm2578_vm8 = vmpackc.low %vm2576_vm9, %vm2577_vm0 }
 0x480   :  { %1099 = vmatpush3.bf16.msk.msra.mxu0 %vm2575_vm15, %v1278_v33  ;;  %vm2579_vm10 = vmpackc.low %vm2563_vm2, %vm2175_vm14  ;;  %vm2580_vm14 = vcmask 1040384  }
 0x481   :  { %vm2581_vm1 = vmmov %vm2580_vm14 }
 0x482   :  { %1117 = vmatpush3.bf16.msk.msra.mxu1 %vm2578_vm8, %v1278_v33  ;;  %v497_v57 = vpop.xlane.xlu1 %496  ;;  %v505_v60 = vpop.xlane.xlu0 %504 }
 0x483   :  { %1101 = vmatmul.mubr.bf16.vlgmr.msra.gmra.mxu0 %v1279_v1  ;;  %1118 = vmatprep.subr.bf16.mxu1 %v1276_v31  ;;  %v970_v0 = vadd.f32 %v497_v57, %v494_v48  ;;  %v971_v30 = vadd.f32 %v505_v60, %v503_v41  ;;  %v777_v31 = vmul.f32 3.0, %v503_v41  ;;  %v963_v43 = vmul.f32 3.0, %v505_v60 }
 0x485   :  { %974 = vst [vmem:[#allocation8] sm:$0x1] %v970_v0  ;;  %976 = vst [vmem:[#allocation8 + $0x1] sm:$0x1] %v971_v30 }
 0x486   :  { %1119 = vmatpush3.bf16.msk.msra.mxu1 %vm2579_vm10, %v1278_v33  ;;  %v565_v4 = vpop.xlane.xlu1 %564 }
 0x489   :  { %1121 = vmatmul.mubr.bf16.vlgmr.msra.gmra.mxu1 %v1279_v1 }
 0x48a   :  { %v567_v24 = vpop.xlane.xlu1 %566 }
 0x48b   :  { %v972_v15 = vadd.f32 %v567_v24, %v565_v4 }
 0x48d   :  { %978 = vst [vmem:[#allocation8 + $0x2] sm:$0x1] %v972_v15 }
 0x543   :  { %v771_v26 = vpop.f32.mrf.mxu0 }
 0x544   :  { %vm778_vm6 = vcmp.lt.f32.partialorder %v771_v26, %v777_v31 }
 0x545   :  { %v1102_v54 = vpop.f32.mrf.mxu0  ;;  %v779_v23 = vsel %vm778_vm6, %v1485_v38, 0.0 }
 0x546   :  { %v780_v39 = vsel %vm2580_vm14, %v779_v23, 0.0 }
 0x547   :  { %v774_v40 = vpop.f32.mrf.mxu0  ;;  %781 = vadd.xlane.f32.xlu1 %v780_v39 }
 0x549   :  { %v1103_v42 = vpop.f32.mrf.mxu0  ;;  %v957_v44 = vpop.f32.mrf.mxu1 }
 0x54a   :  { %vm964_vm2 = vcmp.lt.f32.partialorder %v957_v44, %v963_v43 }
 0x54b   :  { %v1122_v45 = vpop.f32.mrf.mxu1  ;;  %v965_v46 = vsel %vm964_vm2, %v1504_v55, 0.0 }
 0x54c   :  { %v966_v9 = vsel %vm2581_vm1, %v965_v46, 0.0 }
 0x54d   :  { %v960_v59 = vpop.f32.mrf.mxu1  ;;  %967 = vadd.xlane.f32.xlu1 %v966_v9 }
 0x54f   :  { %v1123_v47 = vpop.f32.mrf.mxu1 }
 0x5d0   :  { %v782_v61 = vpop.xlane.xlu1 %781 }
 0x5d6   :  { %v968_v38 = vpop.xlane.xlu1 %967 }
 0x5d7   :  { %v969_v7 = vadd.f32 %v968_v38, %v782_v61 }
 0x5d9   :  { %980 = vst [vmem:[#allocation8 + $0x3] sm:$0x1] %v969_v7 }
 0x5da   :  { %1248 = shalt.err (!%p1245_p5)
}
 0x5db   :  { %991 = dma.vmem_to_hbm [thread:$0]  %s989_s18, 128, %s2360_s5, [#allocation4]  }
 0x5dc   :  { %1261 = dma.done.wait [#allocation4], 128  }
 0x5dd   :  { %1262 = vsyncadd [#allocation4], 4294967168 }
 0x5de   :  { %995 = vsyncpa [#allocation3], 1 }
 0x5df   :  { %996 = vsyncpa [#allocation6], 1 }
 0x5e0   :  { %997 = vsyncpa [#allocation4], 1 }

</bundles_post_ra>
